<compile_context>
chip_gen: v5e
topology: v5e:2x2
jax: 0.10.0
libtpu: 0.0.40
codegen_flags: <defaults>
</compile_context>

<pallas_src>
import itertools
from functools import partial

import numpy as np
import jax
import jax.numpy as jnp
from jax.experimental import pallas as pl
from jax.experimental.pallas import tpu as pltpu

F = 4      # number of features / antecedents
M = 3      # membership functions per feature (triangular: low/medium/high)
K = 3      # number of classes / labels
B = 256    # batch size (one tile, grid=(1,))


def nefclass_kernel(x_ref, mfp_ref, rule_ref, out_ref, *, n_feat, n_mf, class_slabs):
    """Single grid step.

    x_ref    : [F, B]     VMEM  features x batch (batch in lanes)
    mfp_ref  : [4*F*M]    SMEM  divide-free MF params, group-major: sl,tl,sr,tr
                                with memb = max(min(x*sl+tl, x*sr+tr), 0)
    rule_ref : [Rp, F+1]  VMEM  class-contiguous rule table; cols 0..F-1 are
                                condition codes (0..M-1, f32), col F = valid flag
    out_ref  : [K, B]     VMEM  per-class firing-strength sums
    class_slabs : static tuple of (row_offset, row_count) per class, each a
                  multiple of 8 rows (padding rows have valid = 0).
    """
    fm = n_feat * n_mf
    firing = None
    for i in range(n_feat):                       # static unroll over features
        xi = x_ref[i:i + 1, :]                    # [1, B]
        code = rule_ref[:, i:i + 1]               # [Rp, 1] condition code for feature i
        # triangular memberships, divide-free (scalar-from-SMEM * vector + min/max)
        rows = []
        for m in range(n_mf):
            base = i * n_mf + m
            sl = mfp_ref[0 * fm + base]
            tl = mfp_ref[1 * fm + base]
            sr = mfp_ref[2 * fm + base]
            tr = mfp_ref[3 * fm + base]
            rows.append(jnp.maximum(jnp.minimum(xi * sl + tl, xi * sr + tr), 0.0))  # [1, B]
        # exact gather of each rule's selected membership via 2 selects (n_mf == 3)
        gathered = rows[n_mf - 1]
        for m in range(n_mf - 2, -1, -1):
            gathered = jnp.where(code == float(m), rows[m], gathered)               # [Rp, B]
        # fuzzy AND across features == elementwise min (RuleDef.eval)
        firing = gathered if firing is None else jnp.minimum(firing, gathered)
    # zero out padding rows, then per-class sums over contiguous sublane slabs
    # (RuleLayer.__calculate_firing_str) — no MXU involvement.
    valid = rule_ref[:, n_feat:n_feat + 1]        # [Rp, 1] 0/1
    firing = firing * valid
    for k, (off, cnt) in enumerate(class_slabs):
        out_ref[k:k + 1, :] = jnp.sum(firing[off:off + cnt, :], axis=0, keepdims=True)


def build_forward(mfp_np, rule_tbl_np, class_slabs, n_feat, n_mf, n_classes):
    """Returns a jitted forward(x: [F, B]) -> [B, K]."""
    r_pad, cols = rule_tbl_np.shape
    kern = partial(nefclass_kernel, n_feat=n_feat, n_mf=n_mf,
                   class_slabs=tuple(class_slabs))
    mfp = jnp.asarray(mfp_np)          # [4*F*M] f32, lives in SMEM inside the kernel
    rule_tbl = jnp.asarray(rule_tbl_np)

    @jax.jit
    def forward(x):
        f_, b_ = x.shape
        out_kb = pl.pallas_call(
            kern,
            out_shape=jax.ShapeDtypeStruct((n_classes, b_), jnp.float32),
            grid_spec=pltpu.PrefetchScalarGridSpec(
                num_scalar_prefetch=0,
                grid=(1,),
                in_specs=[
                    pl.BlockSpec((f_, b_), lambda i: (0, 0)),                 # x (full)
                    pl.BlockSpec(memory_space=pltpu.MemorySpace.SMEM),        # MF params
                    pl.BlockSpec((r_pad, cols), lambda i: (0, 0)),            # rule table
                ],
                out_specs=pl.BlockSpec((n_classes, b_), lambda i: (0, 0)),
            ),
            compiler_params=pltpu.CompilerParams(
                dimension_semantics=("arbitrary",)),
        )(x, mfp, rule_tbl)
        # torch.stack over classes at dim=1 -> [batch, num_classes]; the transpose
        # is fused into this same jitted executable (no extra dispatch).
        return out_kb.T
    return forward


def pack_mf_params(a_np, b_np, c_np, eps=1e-12):
    """Fold triangular-MF params into divide-free scale/offset form (flat [4*F*M]).

    left  = (x - a)/(b - a) = x*sl + tl,  sl =  1/(b-a), tl = -a/(b-a)
    right = (c - x)/(c - b) = x*sr + tr,  sr = -1/(c-b), tr =  c/(c-b)
    Degenerate memberships (b==a or c==b) are eps-guarded against Inf/NaN.
    """
    den_l = b_np - a_np
    den_r = c_np - b_np
    den_l = np.where(np.abs(den_l) < eps, eps, den_l)
    den_r = np.where(np.abs(den_r) < eps, eps, den_r)
    sl = 1.0 / den_l
    tl = -a_np / den_l
    sr = -1.0 / den_r
    tr = c_np / den_r
    # group-major: index = group*F*M + feature*M + mf
    return np.stack([sl, tl, sr, tr], axis=0).astype(np.float32).reshape(-1)


def build_rule_table(conds_np, rule_cls_np, n_classes, pad_to=8):
    """Reorder rules class-contiguously, pad each class block to a multiple of
    `pad_to` rows. Returns (rule_tbl [R_pad, F+1] f32, class_slabs)."""
    _, f_dim = conds_np.shape
    blocks, slabs, off = [], [], 0
    for k in range(n_classes):
        idx = np.where(rule_cls_np == k)[0]
        cnt = len(idx)
        cnt_pad = max(pad_to, ((cnt + pad_to - 1) // pad_to) * pad_to)
        blk = np.zeros((cnt_pad, f_dim + 1), np.float32)
        if cnt > 0:
            blk[:cnt, :f_dim] = conds_np[idx].astype(np.float32)
            blk[:cnt, f_dim] = 1.0
        blocks.append(blk)
        slabs.append((off, cnt_pad))
        off += cnt_pad
    return np.concatenate(blocks, axis=0), tuple(slabs)


def nefclass_ref(x, a2, b2, c2, conds, rule_cls, num_classes):
    """Plain-JAX reference mirroring the PyTorch semantics (with divides)."""
    xe = x[:, None, :]                                            # [F,1,B]
    left = (xe - a2[:, :, None]) / (b2 - a2)[:, :, None]
    right = (c2[:, :, None] - xe) / (c2 - b2)[:, :, None]
    memb = jnp.maximum(jnp.minimum(left, right), 0.0)             # [F,M,B]
    gathered = jnp.stack([memb[i, conds[:, i], :] for i in range(x.shape[0])], axis=0)
    firing = jnp.min(gathered, axis=0)                            # [R,B]
    cols = []
    for k in range(num_classes):
        idx = np.where(rule_cls == k)[0]
        cols.append(firing[idx].sum(axis=0))
    return jnp.stack(cols, axis=1)                                # [B,K]


if __name__ == "__main__":
    # --- deterministic parameters (synthetic "trained" NEFCLASS) ---
    a_np = np.zeros((F, M), np.float32)
    b_np = np.zeros((F, M), np.float32)
    c_np = np.zeros((F, M), np.float32)
    for i in range(F):
        for m in range(M):
            center = (m + 0.5) / M + 0.03 * i
            a_np[i, m] = center - 1.0 / M
            b_np[i, m] = center
            c_np[i, m] = center + 1.0 / M

    # rule base: all M^F condition combinations, class = sum(conditions) % K
    conds_np = np.array(list(itertools.product(range(M), repeat=F)), dtype=np.int32)  # [R, F]
    rule_cls_np = (conds_np.sum(axis=1) % K).astype(np.int32)                          # [R]

    # packed, divide-free membership parameters (SMEM) and class-contiguous
    # padded rule table (VMEM)
    mfp_np = pack_mf_params(a_np, b_np, c_np)                     # [4*F*M]
    rule_tbl_np, class_slabs = build_rule_table(conds_np, rule_cls_np, K)  # [96, F+1]

    forward = build_forward(mfp_np, rule_tbl_np, class_slabs, F, M, K)

    # --- deterministic input ---
    key = jax.random.PRNGKey(0)
    x = jax.random.uniform(key, (F, B), dtype=jnp.float32)

    out = forward(x)
    out = jax.block_until_ready(out)

    ref = nefclass_ref(x, jnp.asarray(a_np), jnp.asarray(b_np), jnp.asarray(c_np),
                       conds_np, rule_cls_np, K)
    np.testing.assert_allclose(np.asarray(out), np.asarray(ref), rtol=1e-5, atol=1e-5)

    # TODO(synk): dynamic rule management (add_rule / rule_count / list_rules_str)
    # is host-side bookkeeping in the PyTorch module and stays outside the kernel.
    print("KERNEL_OK")
</pallas_src>

<mosaic_0001>
module attributes {stable_mosaic.version = 11 : i64} {
  func.func @nefclass_kernel(%arg0: i32, %arg1: memref<4x256xf32, #tpu.memory_space<vmem>>, %arg2: memref<48xf32, #tpu.memory_space<smem>>, %arg3: memref<96x5xf32, #tpu.memory_space<vmem>>, %arg4: memref<3x256xf32, #tpu.memory_space<vmem>>) attributes {dimension_semantics = [#tpu.dimension_semantics<arbitrary>], iteration_bounds = array<i64: 1>, scalar_prefetch = 0 : i64, scratch_operands = 0 : i64, tpu.core_type = #tpu.core_type<tc>, window_params = [{pipeline_mode = #tpu.pipeline_mode<synchronous>, transform_indices = @transform_0, window_bounds = array<i64: 4, 256>}, {transform_indices = @transform_1, window_bounds = array<i64: 48>}, {pipeline_mode = #tpu.pipeline_mode<synchronous>, transform_indices = @transform_2, window_bounds = array<i64: 96, 5>}, {pipeline_mode = #tpu.pipeline_mode<synchronous>, transform_indices = @transform_3, window_bounds = array<i64: 3, 256>}]} {
    %c0 = arith.constant 0 : index
    %c0_0 = arith.constant 0 : index
    %0 = vector.load %arg1[%c0, %c0_0] : memref<4x256xf32, #tpu.memory_space<vmem>>, vector<1x256xf32>
    %c0_1 = arith.constant 0 : index
    %c0_2 = arith.constant 0 : index
    %1 = vector.load %arg3[%c0_1, %c0_2] : memref<96x5xf32, #tpu.memory_space<vmem>>, vector<96x1xf32>
    %c0_3 = arith.constant 0 : index
    %2 = memref.load %arg2[%c0_3] : memref<48xf32, #tpu.memory_space<smem>>
    %c12 = arith.constant 12 : index
    %3 = memref.load %arg2[%c12] : memref<48xf32, #tpu.memory_space<smem>>
    %c24 = arith.constant 24 : index
    %4 = memref.load %arg2[%c24] : memref<48xf32, #tpu.memory_space<smem>>
    %c36 = arith.constant 36 : index
    %5 = memref.load %arg2[%c36] : memref<48xf32, #tpu.memory_space<smem>>
    %6 = vector.broadcast %2 : f32 to vector<1x256xf32>
    %7 = arith.mulf %0, %6 : vector<1x256xf32>
    %8 = vector.broadcast %3 : f32 to vector<1x256xf32>
    %9 = arith.addf %7, %8 : vector<1x256xf32>
    %10 = vector.broadcast %4 : f32 to vector<1x256xf32>
    %11 = arith.mulf %0, %10 : vector<1x256xf32>
    %12 = vector.broadcast %5 : f32 to vector<1x256xf32>
    %13 = arith.addf %11, %12 : vector<1x256xf32>
    %14 = arith.minimumf %9, %13 : vector<1x256xf32>
    %cst = arith.constant 0.000000e+00 : f32
    %15 = vector.broadcast %cst : f32 to vector<1x256xf32>
    %16 = arith.maximumf %14, %15 : vector<1x256xf32>
    %c1 = arith.constant 1 : index
    %17 = memref.load %arg2[%c1] : memref<48xf32, #tpu.memory_space<smem>>
    %c13 = arith.constant 13 : index
    %18 = memref.load %arg2[%c13] : memref<48xf32, #tpu.memory_space<smem>>
    %c25 = arith.constant 25 : index
    %19 = memref.load %arg2[%c25] : memref<48xf32, #tpu.memory_space<smem>>
    %c37 = arith.constant 37 : index
    %20 = memref.load %arg2[%c37] : memref<48xf32, #tpu.memory_space<smem>>
    %21 = vector.broadcast %17 : f32 to vector<1x256xf32>
    %22 = arith.mulf %0, %21 : vector<1x256xf32>
    %23 = vector.broadcast %18 : f32 to vector<1x256xf32>
    %24 = arith.addf %22, %23 : vector<1x256xf32>
    %25 = vector.broadcast %19 : f32 to vector<1x256xf32>
    %26 = arith.mulf %0, %25 : vector<1x256xf32>
    %27 = vector.broadcast %20 : f32 to vector<1x256xf32>
    %28 = arith.addf %26, %27 : vector<1x256xf32>
    %29 = arith.minimumf %24, %28 : vector<1x256xf32>
    %cst_4 = arith.constant 0.000000e+00 : f32
    %30 = vector.broadcast %cst_4 : f32 to vector<1x256xf32>
    %31 = arith.maximumf %29, %30 : vector<1x256xf32>
    %c2 = arith.constant 2 : index
    %32 = memref.load %arg2[%c2] : memref<48xf32, #tpu.memory_space<smem>>
    %c14 = arith.constant 14 : index
    %33 = memref.load %arg2[%c14] : memref<48xf32, #tpu.memory_space<smem>>
    %c26 = arith.constant 26 : index
    %34 = memref.load %arg2[%c26] : memref<48xf32, #tpu.memory_space<smem>>
    %c38 = arith.constant 38 : index
    %35 = memref.load %arg2[%c38] : memref<48xf32, #tpu.memory_space<smem>>
    %36 = vector.broadcast %32 : f32 to vector<1x256xf32>
    %37 = arith.mulf %0, %36 : vector<1x256xf32>
    %38 = vector.broadcast %33 : f32 to vector<1x256xf32>
    %39 = arith.addf %37, %38 : vector<1x256xf32>
    %40 = vector.broadcast %34 : f32 to vector<1x256xf32>
    %41 = arith.mulf %0, %40 : vector<1x256xf32>
    %42 = vector.broadcast %35 : f32 to vector<1x256xf32>
    %43 = arith.addf %41, %42 : vector<1x256xf32>
    %44 = arith.minimumf %39, %43 : vector<1x256xf32>
    %cst_5 = arith.constant 0.000000e+00 : f32
    %45 = vector.broadcast %cst_5 : f32 to vector<1x256xf32>
    %46 = arith.maximumf %44, %45 : vector<1x256xf32>
    %cst_6 = arith.constant 1.000000e+00 : f32
    %47 = vector.broadcast %cst_6 : f32 to vector<96x1xf32>
    %48 = arith.cmpf oeq, %1, %47 : vector<96x1xf32>
    %49 = vector.shape_cast %48 : vector<96x1xi1> to vector<96x1xi1>
    %50 = vector.broadcast %49 : vector<96x1xi1> to vector<96x256xi1>
    %51 = vector.shape_cast %31 : vector<1x256xf32> to vector<1x256xf32>
    %52 = vector.broadcast %51 : vector<1x256xf32> to vector<96x256xf32>
    %53 = vector.shape_cast %46 : vector<1x256xf32> to vector<1x256xf32>
    %54 = vector.broadcast %53 : vector<1x256xf32> to vector<96x256xf32>
    %55 = arith.select %50, %52, %54 : vector<96x256xi1>, vector<96x256xf32>
    %cst_7 = arith.constant 0.000000e+00 : f32
    %56 = vector.broadcast %cst_7 : f32 to vector<96x1xf32>
    %57 = arith.cmpf oeq, %1, %56 : vector<96x1xf32>
    %58 = vector.shape_cast %57 : vector<96x1xi1> to vector<96x1xi1>
    %59 = vector.broadcast %58 : vector<96x1xi1> to vector<96x256xi1>
    %60 = vector.shape_cast %16 : vector<1x256xf32> to vector<1x256xf32>
    %61 = vector.broadcast %60 : vector<1x256xf32> to vector<96x256xf32>
    %62 = arith.select %59, %61, %55 : vector<96x256xi1>, vector<96x256xf32>
    %c1_8 = arith.constant 1 : index
    %c0_9 = arith.constant 0 : index
    %63 = vector.load %arg1[%c1_8, %c0_9] : memref<4x256xf32, #tpu.memory_space<vmem>>, vector<1x256xf32>
    %c0_10 = arith.constant 0 : index
    %c1_11 = arith.constant 1 : index
    %64 = vector.load %arg3[%c0_10, %c1_11] : memref<96x5xf32, #tpu.memory_space<vmem>>, vector<96x1xf32>
    %c3 = arith.constant 3 : index
    %65 = memref.load %arg2[%c3] : memref<48xf32, #tpu.memory_space<smem>>
    %c15 = arith.constant 15 : index
    %66 = memref.load %arg2[%c15] : memref<48xf32, #tpu.memory_space<smem>>
    %c27 = arith.constant 27 : index
    %67 = memref.load %arg2[%c27] : memref<48xf32, #tpu.memory_space<smem>>
    %c39 = arith.constant 39 : index
    %68 = memref.load %arg2[%c39] : memref<48xf32, #tpu.memory_space<smem>>
    %69 = vector.broadcast %65 : f32 to vector<1x256xf32>
    %70 = arith.mulf %63, %69 : vector<1x256xf32>
    %71 = vector.broadcast %66 : f32 to vector<1x256xf32>
    %72 = arith.addf %70, %71 : vector<1x256xf32>
    %73 = vector.broadcast %67 : f32 to vector<1x256xf32>
    %74 = arith.mulf %63, %73 : vector<1x256xf32>
    %75 = vector.broadcast %68 : f32 to vector<1x256xf32>
    %76 = arith.addf %74, %75 : vector<1x256xf32>
    %77 = arith.minimumf %72, %76 : vector<1x256xf32>
    %cst_12 = arith.constant 0.000000e+00 : f32
    %78 = vector.broadcast %cst_12 : f32 to vector<1x256xf32>
    %79 = arith.maximumf %77, %78 : vector<1x256xf32>
    %c4 = arith.constant 4 : index
    %80 = memref.load %arg2[%c4] : memref<48xf32, #tpu.memory_space<smem>>
    %c16 = arith.constant 16 : index
    %81 = memref.load %arg2[%c16] : memref<48xf32, #tpu.memory_space<smem>>
    %c28 = arith.constant 28 : index
    %82 = memref.load %arg2[%c28] : memref<48xf32, #tpu.memory_space<smem>>
    %c40 = arith.constant 40 : index
    %83 = memref.load %arg2[%c40] : memref<48xf32, #tpu.memory_space<smem>>
    %84 = vector.broadcast %80 : f32 to vector<1x256xf32>
    %85 = arith.mulf %63, %84 : vector<1x256xf32>
    %86 = vector.broadcast %81 : f32 to vector<1x256xf32>
    %87 = arith.addf %85, %86 : vector<1x256xf32>
    %88 = vector.broadcast %82 : f32 to vector<1x256xf32>
    %89 = arith.mulf %63, %88 : vector<1x256xf32>
    %90 = vector.broadcast %83 : f32 to vector<1x256xf32>
    %91 = arith.addf %89, %90 : vector<1x256xf32>
    %92 = arith.minimumf %87, %91 : vector<1x256xf32>
    %cst_13 = arith.constant 0.000000e+00 : f32
    %93 = vector.broadcast %cst_13 : f32 to vector<1x256xf32>
    %94 = arith.maximumf %92, %93 : vector<1x256xf32>
    %c5 = arith.constant 5 : index
    %95 = memref.load %arg2[%c5] : memref<48xf32, #tpu.memory_space<smem>>
    %c17 = arith.constant 17 : index
    %96 = memref.load %arg2[%c17] : memref<48xf32, #tpu.memory_space<smem>>
    %c29 = arith.constant 29 : index
    %97 = memref.load %arg2[%c29] : memref<48xf32, #tpu.memory_space<smem>>
    %c41 = arith.constant 41 : index
    %98 = memref.load %arg2[%c41] : memref<48xf32, #tpu.memory_space<smem>>
    %99 = vector.broadcast %95 : f32 to vector<1x256xf32>
    %100 = arith.mulf %63, %99 : vector<1x256xf32>
    %101 = vector.broadcast %96 : f32 to vector<1x256xf32>
    %102 = arith.addf %100, %101 : vector<1x256xf32>
    %103 = vector.broadcast %97 : f32 to vector<1x256xf32>
    %104 = arith.mulf %63, %103 : vector<1x256xf32>
    %105 = vector.broadcast %98 : f32 to vector<1x256xf32>
    %106 = arith.addf %104, %105 : vector<1x256xf32>
    %107 = arith.minimumf %102, %106 : vector<1x256xf32>
    %cst_14 = arith.constant 0.000000e+00 : f32
    %108 = vector.broadcast %cst_14 : f32 to vector<1x256xf32>
    %109 = arith.maximumf %107, %108 : vector<1x256xf32>
    %cst_15 = arith.constant 1.000000e+00 : f32
    %110 = vector.broadcast %cst_15 : f32 to vector<96x1xf32>
    %111 = arith.cmpf oeq, %64, %110 : vector<96x1xf32>
    %112 = vector.shape_cast %111 : vector<96x1xi1> to vector<96x1xi1>
    %113 = vector.broadcast %112 : vector<96x1xi1> to vector<96x256xi1>
    %114 = vector.shape_cast %94 : vector<1x256xf32> to vector<1x256xf32>
    %115 = vector.broadcast %114 : vector<1x256xf32> to vector<96x256xf32>
    %116 = vector.shape_cast %109 : vector<1x256xf32> to vector<1x256xf32>
    %117 = vector.broadcast %116 : vector<1x256xf32> to vector<96x256xf32>
    %118 = arith.select %113, %115, %117 : vector<96x256xi1>, vector<96x256xf32>
    %cst_16 = arith.constant 0.000000e+00 : f32
    %119 = vector.broadcast %cst_16 : f32 to vector<96x1xf32>
    %120 = arith.cmpf oeq, %64, %119 : vector<96x1xf32>
    %121 = vector.shape_cast %120 : vector<96x1xi1> to vector<96x1xi1>
    %122 = vector.broadcast %121 : vector<96x1xi1> to vector<96x256xi1>
    %123 = vector.shape_cast %79 : vector<1x256xf32> to vector<1x256xf32>
    %124 = vector.broadcast %123 : vector<1x256xf32> to vector<96x256xf32>
    %125 = arith.select %122, %124, %118 : vector<96x256xi1>, vector<96x256xf32>
    %126 = arith.minimumf %62, %125 : vector<96x256xf32>
    %c2_17 = arith.constant 2 : index
    %c0_18 = arith.constant 0 : index
    %127 = vector.load %arg1[%c2_17, %c0_18] : memref<4x256xf32, #tpu.memory_space<vmem>>, vector<1x256xf32>
    %c0_19 = arith.constant 0 : index
    %c2_20 = arith.constant 2 : index
    %128 = vector.load %arg3[%c0_19, %c2_20] : memref<96x5xf32, #tpu.memory_space<vmem>>, vector<96x1xf32>
    %c6 = arith.constant 6 : index
    %129 = memref.load %arg2[%c6] : memref<48xf32, #tpu.memory_space<smem>>
    %c18 = arith.constant 18 : index
    %130 = memref.load %arg2[%c18] : memref<48xf32, #tpu.memory_space<smem>>
    %c30 = arith.constant 30 : index
    %131 = memref.load %arg2[%c30] : memref<48xf32, #tpu.memory_space<smem>>
    %c42 = arith.constant 42 : index
    %132 = memref.load %arg2[%c42] : memref<48xf32, #tpu.memory_space<smem>>
    %133 = vector.broadcast %129 : f32 to vector<1x256xf32>
    %134 = arith.mulf %127, %133 : vector<1x256xf32>
    %135 = vector.broadcast %130 : f32 to vector<1x256xf32>
    %136 = arith.addf %134, %135 : vector<1x256xf32>
    %137 = vector.broadcast %131 : f32 to vector<1x256xf32>
    %138 = arith.mulf %127, %137 : vector<1x256xf32>
    %139 = vector.broadcast %132 : f32 to vector<1x256xf32>
    %140 = arith.addf %138, %139 : vector<1x256xf32>
    %141 = arith.minimumf %136, %140 : vector<1x256xf32>
    %cst_21 = arith.constant 0.000000e+00 : f32
    %142 = vector.broadcast %cst_21 : f32 to vector<1x256xf32>
    %143 = arith.maximumf %141, %142 : vector<1x256xf32>
    %c7 = arith.constant 7 : index
    %144 = memref.load %arg2[%c7] : memref<48xf32, #tpu.memory_space<smem>>
    %c19 = arith.constant 19 : index
    %145 = memref.load %arg2[%c19] : memref<48xf32, #tpu.memory_space<smem>>
    %c31 = arith.constant 31 : index
    %146 = memref.load %arg2[%c31] : memref<48xf32, #tpu.memory_space<smem>>
    %c43 = arith.constant 43 : index
    %147 = memref.load %arg2[%c43] : memref<48xf32, #tpu.memory_space<smem>>
    %148 = vector.broadcast %144 : f32 to vector<1x256xf32>
    %149 = arith.mulf %127, %148 : vector<1x256xf32>
    %150 = vector.broadcast %145 : f32 to vector<1x256xf32>
    %151 = arith.addf %149, %150 : vector<1x256xf32>
    %152 = vector.broadcast %146 : f32 to vector<1x256xf32>
    %153 = arith.mulf %127, %152 : vector<1x256xf32>
    %154 = vector.broadcast %147 : f32 to vector<1x256xf32>
    %155 = arith.addf %153, %154 : vector<1x256xf32>
    %156 = arith.minimumf %151, %155 : vector<1x256xf32>
    %cst_22 = arith.constant 0.000000e+00 : f32
    %157 = vector.broadcast %cst_22 : f32 to vector<1x256xf32>
    %158 = arith.maximumf %156, %157 : vector<1x256xf32>
    %c8 = arith.constant 8 : index
    %159 = memref.load %arg2[%c8] : memref<48xf32, #tpu.memory_space<smem>>
    %c20 = arith.constant 20 : index
    %160 = memref.load %arg2[%c20] : memref<48xf32, #tpu.memory_space<smem>>
    %c32 = arith.constant 32 : index
    %161 = memref.load %arg2[%c32] : memref<48xf32, #tpu.memory_space<smem>>
    %c44 = arith.constant 44 : index
    %162 = memref.load %arg2[%c44] : memref<48xf32, #tpu.memory_space<smem>>
    %163 = vector.broadcast %159 : f32 to vector<1x256xf32>
    %164 = arith.mulf %127, %163 : vector<1x256xf32>
    %165 = vector.broadcast %160 : f32 to vector<1x256xf32>
    %166 = arith.addf %164, %165 : vector<1x256xf32>
    %167 = vector.broadcast %161 : f32 to vector<1x256xf32>
    %168 = arith.mulf %127, %167 : vector<1x256xf32>
    %169 = vector.broadcast %162 : f32 to vector<1x256xf32>
    %170 = arith.addf %168, %169 : vector<1x256xf32>
    %171 = arith.minimumf %166, %170 : vector<1x256xf32>
    %cst_23 = arith.constant 0.000000e+00 : f32
    %172 = vector.broadcast %cst_23 : f32 to vector<1x256xf32>
    %173 = arith.maximumf %171, %172 : vector<1x256xf32>
    %cst_24 = arith.constant 1.000000e+00 : f32
    %174 = vector.broadcast %cst_24 : f32 to vector<96x1xf32>
    %175 = arith.cmpf oeq, %128, %174 : vector<96x1xf32>
    %176 = vector.shape_cast %175 : vector<96x1xi1> to vector<96x1xi1>
    %177 = vector.broadcast %176 : vector<96x1xi1> to vector<96x256xi1>
    %178 = vector.shape_cast %158 : vector<1x256xf32> to vector<1x256xf32>
    %179 = vector.broadcast %178 : vector<1x256xf32> to vector<96x256xf32>
    %180 = vector.shape_cast %173 : vector<1x256xf32> to vector<1x256xf32>
    %181 = vector.broadcast %180 : vector<1x256xf32> to vector<96x256xf32>
    %182 = arith.select %177, %179, %181 : vector<96x256xi1>, vector<96x256xf32>
    %cst_25 = arith.constant 0.000000e+00 : f32
    %183 = vector.broadcast %cst_25 : f32 to vector<96x1xf32>
    %184 = arith.cmpf oeq, %128, %183 : vector<96x1xf32>
    %185 = vector.shape_cast %184 : vector<96x1xi1> to vector<96x1xi1>
    %186 = vector.broadcast %185 : vector<96x1xi1> to vector<96x256xi1>
    %187 = vector.shape_cast %143 : vector<1x256xf32> to vector<1x256xf32>
    %188 = vector.broadcast %187 : vector<1x256xf32> to vector<96x256xf32>
    %189 = arith.select %186, %188, %182 : vector<96x256xi1>, vector<96x256xf32>
    %190 = arith.minimumf %126, %189 : vector<96x256xf32>
    %c3_26 = arith.constant 3 : index
    %c0_27 = arith.constant 0 : index
    %191 = vector.load %arg1[%c3_26, %c0_27] : memref<4x256xf32, #tpu.memory_space<vmem>>, vector<1x256xf32>
    %c0_28 = arith.constant 0 : index
    %c3_29 = arith.constant 3 : index
    %192 = vector.load %arg3[%c0_28, %c3_29] : memref<96x5xf32, #tpu.memory_space<vmem>>, vector<96x1xf32>
    %c9 = arith.constant 9 : index
    %193 = memref.load %arg2[%c9] : memref<48xf32, #tpu.memory_space<smem>>
    %c21 = arith.constant 21 : index
    %194 = memref.load %arg2[%c21] : memref<48xf32, #tpu.memory_space<smem>>
    %c33 = arith.constant 33 : index
    %195 = memref.load %arg2[%c33] : memref<48xf32, #tpu.memory_space<smem>>
    %c45 = arith.constant 45 : index
    %196 = memref.load %arg2[%c45] : memref<48xf32, #tpu.memory_space<smem>>
    %197 = vector.broadcast %193 : f32 to vector<1x256xf32>
    %198 = arith.mulf %191, %197 : vector<1x256xf32>
    %199 = vector.broadcast %194 : f32 to vector<1x256xf32>
    %200 = arith.addf %198, %199 : vector<1x256xf32>
    %201 = vector.broadcast %195 : f32 to vector<1x256xf32>
    %202 = arith.mulf %191, %201 : vector<1x256xf32>
    %203 = vector.broadcast %196 : f32 to vector<1x256xf32>
    %204 = arith.addf %202, %203 : vector<1x256xf32>
    %205 = arith.minimumf %200, %204 : vector<1x256xf32>
    %cst_30 = arith.constant 0.000000e+00 : f32
    %206 = vector.broadcast %cst_30 : f32 to vector<1x256xf32>
    %207 = arith.maximumf %205, %206 : vector<1x256xf32>
    %c10 = arith.constant 10 : index
    %208 = memref.load %arg2[%c10] : memref<48xf32, #tpu.memory_space<smem>>
    %c22 = arith.constant 22 : index
    %209 = memref.load %arg2[%c22] : memref<48xf32, #tpu.memory_space<smem>>
    %c34 = arith.constant 34 : index
    %210 = memref.load %arg2[%c34] : memref<48xf32, #tpu.memory_space<smem>>
    %c46 = arith.constant 46 : index
    %211 = memref.load %arg2[%c46] : memref<48xf32, #tpu.memory_space<smem>>
    %212 = vector.broadcast %208 : f32 to vector<1x256xf32>
    %213 = arith.mulf %191, %212 : vector<1x256xf32>
    %214 = vector.broadcast %209 : f32 to vector<1x256xf32>
    %215 = arith.addf %213, %214 : vector<1x256xf32>
    %216 = vector.broadcast %210 : f32 to vector<1x256xf32>
    %217 = arith.mulf %191, %216 : vector<1x256xf32>
    %218 = vector.broadcast %211 : f32 to vector<1x256xf32>
    %219 = arith.addf %217, %218 : vector<1x256xf32>
    %220 = arith.minimumf %215, %219 : vector<1x256xf32>
    %cst_31 = arith.constant 0.000000e+00 : f32
    %221 = vector.broadcast %cst_31 : f32 to vector<1x256xf32>
    %222 = arith.maximumf %220, %221 : vector<1x256xf32>
    %c11 = arith.constant 11 : index
    %223 = memref.load %arg2[%c11] : memref<48xf32, #tpu.memory_space<smem>>
    %c23 = arith.constant 23 : index
    %224 = memref.load %arg2[%c23] : memref<48xf32, #tpu.memory_space<smem>>
    %c35 = arith.constant 35 : index
    %225 = memref.load %arg2[%c35] : memref<48xf32, #tpu.memory_space<smem>>
    %c47 = arith.constant 47 : index
    %226 = memref.load %arg2[%c47] : memref<48xf32, #tpu.memory_space<smem>>
    %227 = vector.broadcast %223 : f32 to vector<1x256xf32>
    %228 = arith.mulf %191, %227 : vector<1x256xf32>
    %229 = vector.broadcast %224 : f32 to vector<1x256xf32>
    %230 = arith.addf %228, %229 : vector<1x256xf32>
    %231 = vector.broadcast %225 : f32 to vector<1x256xf32>
    %232 = arith.mulf %191, %231 : vector<1x256xf32>
    %233 = vector.broadcast %226 : f32 to vector<1x256xf32>
    %234 = arith.addf %232, %233 : vector<1x256xf32>
    %235 = arith.minimumf %230, %234 : vector<1x256xf32>
    %cst_32 = arith.constant 0.000000e+00 : f32
    %236 = vector.broadcast %cst_32 : f32 to vector<1x256xf32>
    %237 = arith.maximumf %235, %236 : vector<1x256xf32>
    %cst_33 = arith.constant 1.000000e+00 : f32
    %238 = vector.broadcast %cst_33 : f32 to vector<96x1xf32>
    %239 = arith.cmpf oeq, %192, %238 : vector<96x1xf32>
    %240 = vector.shape_cast %239 : vector<96x1xi1> to vector<96x1xi1>
    %241 = vector.broadcast %240 : vector<96x1xi1> to vector<96x256xi1>
    %242 = vector.shape_cast %222 : vector<1x256xf32> to vector<1x256xf32>
    %243 = vector.broadcast %242 : vector<1x256xf32> to vector<96x256xf32>
    %244 = vector.shape_cast %237 : vector<1x256xf32> to vector<1x256xf32>
    %245 = vector.broadcast %244 : vector<1x256xf32> to vector<96x256xf32>
    %246 = arith.select %241, %243, %245 : vector<96x256xi1>, vector<96x256xf32>
    %cst_34 = arith.constant 0.000000e+00 : f32
    %247 = vector.broadcast %cst_34 : f32 to vector<96x1xf32>
    %248 = arith.cmpf oeq, %192, %247 : vector<96x1xf32>
    %249 = vector.shape_cast %248 : vector<96x1xi1> to vector<96x1xi1>
    %250 = vector.broadcast %249 : vector<96x1xi1> to vector<96x256xi1>
    %251 = vector.shape_cast %207 : vector<1x256xf32> to vector<1x256xf32>
    %252 = vector.broadcast %251 : vector<1x256xf32> to vector<96x256xf32>
    %253 = arith.select %250, %252, %246 : vector<96x256xi1>, vector<96x256xf32>
    %254 = arith.minimumf %190, %253 : vector<96x256xf32>
    %c0_35 = arith.constant 0 : index
    %c4_36 = arith.constant 4 : index
    %255 = vector.load %arg3[%c0_35, %c4_36] : memref<96x5xf32, #tpu.memory_space<vmem>>, vector<96x1xf32>
    %256 = vector.broadcast %255 : vector<96x1xf32> to vector<96x256xf32>
    %257 = arith.mulf %254, %256 : vector<96x256xf32>
    %258 = vector.extract_strided_slice %257 {offsets = [0, 0], sizes = [32, 256], strides = [1, 1]} : vector<96x256xf32> to vector<32x256xf32>
    %cst_37 = arith.constant dense<0.000000e+00> : vector<256xf32>
    %259 = vector.multi_reduction <add>, %258, %cst_37 [0] : vector<32x256xf32> to vector<256xf32>
    %260 = vector.shape_cast %259 : vector<256xf32> to vector<1x256xf32>
    %c0_38 = arith.constant 0 : index
    %c0_39 = arith.constant 0 : index
    %261 = vector.load %arg4[%c0_38, %c0_39] : memref<3x256xf32, #tpu.memory_space<vmem>>, vector<1x256xf32>
    tpu.vector_store %arg4[%c0_38, %c0_39], %260 {strides = array<i32>} : memref<3x256xf32, #tpu.memory_space<vmem>>, vector<1x256xf32>,
    %262 = vector.extract_strided_slice %257 {offsets = [32, 0], sizes = [32, 256], strides = [1, 1]} : vector<96x256xf32> to vector<32x256xf32>
    %cst_40 = arith.constant dense<0.000000e+00> : vector<256xf32>
    %263 = vector.multi_reduction <add>, %262, %cst_40 [0] : vector<32x256xf32> to vector<256xf32>
    %264 = vector.shape_cast %263 : vector<256xf32> to vector<1x256xf32>
    %c1_41 = arith.constant 1 : index
    %c0_42 = arith.constant 0 : index
    %265 = vector.load %arg4[%c1_41, %c0_42] : memref<3x256xf32, #tpu.memory_space<vmem>>, vector<1x256xf32>
    tpu.vector_store %arg4[%c1_41, %c0_42], %264 {strides = array<i32>} : memref<3x256xf32, #tpu.memory_space<vmem>>, vector<1x256xf32>,
    %266 = vector.extract_strided_slice %257 {offsets = [64, 0], sizes = [32, 256], strides = [1, 1]} : vector<96x256xf32> to vector<32x256xf32>
    %cst_43 = arith.constant dense<0.000000e+00> : vector<256xf32>
    %267 = vector.multi_reduction <add>, %266, %cst_43 [0] : vector<32x256xf32> to vector<256xf32>
    %268 = vector.shape_cast %267 : vector<256xf32> to vector<1x256xf32>
    %c2_44 = arith.constant 2 : index
    %c0_45 = arith.constant 0 : index
    %269 = vector.load %arg4[%c2_44, %c0_45] : memref<3x256xf32, #tpu.memory_space<vmem>>, vector<1x256xf32>
    tpu.vector_store %arg4[%c2_44, %c0_45], %268 {strides = array<i32>} : memref<3x256xf32, #tpu.memory_space<vmem>>, vector<1x256xf32>,
    return
  }
  func.func @transform_0(%arg0: i32) -> (i32, i32) {
    %c0_i32 = arith.constant 0 : i32
    %c0_i32_0 = arith.constant 0 : i32
    %c0_i32_1 = arith.constant 0 : i32
    return %c0_i32, %c0_i32_0 : i32, i32
  }
  func.func @transform_1(%arg0: i32) -> i32 {
    %c0_i32 = arith.constant 0 : i32
    %c0_i32_0 = arith.constant 0 : i32
    return %c0_i32 : i32
  }
  func.func @transform_2(%arg0: i32) -> (i32, i32) {
    %c0_i32 = arith.constant 0 : i32
    %c0_i32_0 = arith.constant 0 : i32
    %c0_i32_1 = arith.constant 0 : i32
    return %c0_i32, %c0_i32_0 : i32, i32
  }
  func.func @transform_3(%arg0: i32) -> (i32, i32) {
    %c0_i32 = arith.constant 0 : i32
    %c0_i32_0 = arith.constant 0 : i32
    %c0_i32_1 = arith.constant 0 : i32
    return %c0_i32, %c0_i32_0 : i32, i32
  }
}

</mosaic_0001>

<bundles_post_ra>
// kernel: forward.1
= control target key start
LH: loop header
LB: loop body
LE: loop exit
PB: predicated region body
PF: predicated region fallthrough
CT: control target
= control target key end

     0   :  { %8 = vsyncpa [#allocation3], 0  ;;  %s2558_s0 = inlined_call_operand.hbm [shape: f32[4,256], index: 0, kind: input, shape index: {}]   ;;  %s2559_s1 = inlined_call_operand.hbm [shape: f32[48], index: 1, kind: input, shape index: {}]   ;;  %s2560_s2 = inlined_call_operand.hbm [shape: f32[96,5], index: 2, kind: input, shape index: {}]   ;;  %s2561_s3 = inlined_call_operand.hbm [shape: f32[3,256], index: 3, kind: output, shape index: {}]  }
   0x1   :  { %9 = vsyncpa [#allocation5], 0 }
   0x2   :  { %10 = vsyncpa [#allocation8], 0 }
   0x3   :  { %11 = vsyncpa [#allocation4], 0  ;;  %s17_s14 = sshll.u32 %s2558_s0, 4  ;;  %s1359_s15 = smov [#allocation2]   ;;  %s18_s14 = int_to_ptr.hbm [resolvable:$true] %s17_s14 }
   0x4   :  { %s19_s16 = sshll.u32 %s1359_s15, 4  ;;  %s28_s19 = sshll.u32 %s2559_s1, 4  ;;  %s20_s16 = int_to_ptr.vmem [resolvable:$true] %s19_s16  ;;  %s29_s19 = int_to_ptr.hbm [resolvable:$true] %s28_s19 }
   0x5   :  { %22 = dma.hbm_to_vmem [thread:$0]  %s18_s14, 128, %s20_s16, [#allocation3]  }
   0x6   :  { %s1360_s20 = smov [#allocation6]   ;;  %s36_s23 = sshll.u32 %s2560_s2, 4  ;;  %s37_s23 = int_to_ptr.hbm [resolvable:$true] %s36_s23 }
   0x7   :  { %31 = dma.hbm_to_smem %s29_s19, 16, %s1360_s20, [#allocation5]  }
   0x8   :  { %s1361_s24 = smov [#allocation7]   ;;  %s1362_s0 = smov 128  }
   0x9   :  { %s38_s25 = sshll.u32 %s1361_s24, 4  ;;  %s1363_s26 = smov 8   ;;  %s39_s25 = int_to_ptr.vmem [resolvable:$true] %s38_s25 }
   0xa   :  { %44 = dma.hbm_to_vmem [thread:$0]  %s37_s23, 1536, %s39_s25, [#allocation8], %s1362_s0, %s1362_s0, %s1363_s26  }
   0xb   :  { %1351 = dma.done.wait [#allocation3], 128  }
   0xc   :  { %1352 = vsyncadd [#allocation3], 4294967168 }
   0xd   :  { %1353 = dma.done.wait [#allocation5], 16  }
   0xe   :  { %1354 = vsyncadd [#allocation5], 4294967280 }
   0xf   :  { %1355 = dma.done.wait [#allocation8], 1536  }
  0x10   :  { %1356 = vsyncadd [#allocation8], 4294965760 }
  0x11   :  { %57 = sfence }
  0x12   :  { %v1399_v0 = vld [vmem:[#allocation7 + $0x20] sm:$0xff]  ;;  %v61_v1 = vld [vmem:[#allocation7 + $0x10] sm:$0xff]  ;;  %v1364_v3 = vmov 0   ;;  %v64_v7 = vld [vmem:[#allocation7 + $0x28] sm:$0xff]  ;;  %v1365_v37 = vmov 1   ;;  %s1186_s1 = sld [smem:[#allocation6 + $0x1]] }
  0x13   :  { %v59_v2 = vld [vmem:[#allocation7] sm:$0xff]  ;;  %1243 = vset.pattern.permute.xlu2 %v1364_v3  ;;  %1242 = vset.pattern.permute.xlu1 %v1364_v3  ;;  %vm117_vm0 = vcmp.eq.f32.partialorder %v1399_v0, 1.0  ;;  %vm115_vm1 = vcmp.eq.f32.partialorder %v61_v1, 1.0  ;;  %v62_v8 = vld [vmem:[#allocation7 + $0x18] sm:$0xff]  ;;  %v60_v9 = vld [vmem:[#allocation7 + $0x8] sm:$0xff]  ;;  %vm118_vm3 = vcmp.eq.f32.partialorder %v64_v7, 1.0 }
  0x14   :  { %vm113_vm2 = vcmp.eq.f32.partialorder %v59_v2, 1.0  ;;  %1241 = vset.pattern.permute.xlu0 %v1364_v3  ;;  %v1406_v4 = vsel %vm117_vm0, 1, %v1364_v3  ;;  %v1409_v5 = vsel %vm115_vm1, 1, %v1364_v3  ;;  %vm116_vm4 = vcmp.eq.f32.partialorder %v62_v8, 1.0  ;;  %v67_v13 = vld [vmem:[#allocation7 + $0x40] sm:$0xff]  ;;  %v66_v14 = vld [vmem:[#allocation7 + $0x38] sm:$0xff] }
  0x15   :  { %v1412_v6 = vsel %vm113_vm2, 1, %v1364_v3  ;;  %150 = vperm.xlu2 %1243, %v1406_v4   ;;  %144 = vperm.xlu1 %1242, %v1409_v5   ;;  %vm114_vm5 = vcmp.eq.f32.partialorder %v60_v9, 1.0  ;;  %v1418_v10 = vsel %vm118_vm3, 1, %v1364_v3  ;;  %v1421_v11 = vsel %vm116_vm4, 1, %v1364_v3  ;;  %v65_v15 = vld [vmem:[#allocation7 + $0x30] sm:$0xff]  ;;  %v70_v19 = vld [vmem:[#allocation7 + $0x58] sm:$0xff] }
  0x16   :  { %138 = vperm.xlu0 %1241, %v1412_v6   ;;  %v1424_v12 = vsel %vm114_vm5, 1, %v1364_v3  ;;  %vm121_vm6 = vcmp.eq.f32.partialorder %v67_v13, 1.0  ;;  %vm120_vm7 = vcmp.eq.f32.partialorder %v66_v14, 1.0  ;;  %vm119_vm8 = vcmp.eq.f32.partialorder %v65_v15, 1.0  ;;  %v69_v20 = vld [vmem:[#allocation7 + $0x50] sm:$0xff]  ;;  %v1440_v21 = vld [vmem:[#allocation7 + $0x48] sm:$0xff] }
  0x17   :  { %v1430_v16 = vsel %vm121_vm6, 1, %v1364_v3  ;;  %v1433_v17 = vsel %vm120_vm7, 1, %v1364_v3  ;;  %v1436_v18 = vsel %vm119_vm8, 1, %v1364_v3  ;;  %2592 = vst [vmem:[#allocation14_spill] sm:$0xff] %v1440_v21  ;;  %vm124_vm9 = vcmp.eq.f32.partialorder %v70_v19, 1.0  ;;  %s1515_s2 = sld [smem:[#allocation6 + $0xd]] }
  0x18   :  { %vm123_vm10 = vcmp.eq.f32.partialorder %v69_v20, 1.0  ;;  %vm122_vm11 = vcmp.eq.f32.partialorder %v1440_v21, 1.0  ;;  %v1445_v22 = vsel %vm124_vm9, 1, %v1364_v3  ;;  %vm221_vm12 = vcmp.eq.f32.partialorder %v61_v1, 0.0  ;;  %s1188_s27 = sld [smem:[#allocation6 + $0x19]] }
  0x19   :  { %2593 = vst [vmem:[#allocation15_spill] sm:$0xff] %v1445_v22  ;;  %v1448_v23 = vsel %vm123_vm10, 1, %v1364_v3  ;;  %v1451_v24 = vsel %vm122_vm11, 1, %v1364_v3  ;;  %vm220_vm13 = vcmp.eq.f32.partialorder %v60_v9, 0.0  ;;  %vm219_vm14 = vcmp.eq.f32.partialorder %v59_v2, 0.0  ;;  %s1518_s28 = sld [smem:[#allocation6 + $0x25]] }
  0x1a   :  { %2594 = vst [vmem:[#allocation16_spill] sm:$0xff] %v1448_v23  ;;  %v1457_v25 = vsel %vm221_vm12, 1, %v1364_v3  ;;  %v1460_v26 = vsel %vm220_vm13, 1, %v1364_v3  ;;  %v1463_v27 = vsel %vm219_vm14, 1, %v1364_v3  ;;  %vm224_vm15 = vcmp.eq.f32.partialorder %v64_v7, 0.0  ;;  %s1190_s29 = sld [smem:[#allocation6 + $0x2]] }
  0x1b   :  { %2595 = vst [vmem:[#allocation17_spill] sm:$0xff] %v1460_v26  ;;  %vm223_vm0 = vcmp.eq.f32.partialorder %v1399_v0, 0.0  ;;  %vm222_vm1 = vcmp.eq.f32.partialorder %v62_v8, 0.0  ;;  %v1470_v28 = vsel %vm224_vm15, 1, %v1364_v3  ;;  %vm227_vm2 = vcmp.eq.f32.partialorder %v67_v13, 0.0  ;;  %s1192_s30 = sld [smem:[#allocation6 + $0x1a]] }
  0x1c   :  { %v1473_v29 = vsel %vm223_vm0, 1, %v1364_v3  ;;  %v1476_v30 = vsel %vm222_vm1, 1, %v1364_v3  ;;  %vm226_vm3 = vcmp.eq.f32.partialorder %v66_v14, 0.0  ;;  %vm225_vm4 = vcmp.eq.f32.partialorder %v65_v15, 0.0  ;;  %s71_s4 = sld [smem:[#allocation6]] }
  0x1d   :  { %153 = vperm.xlu2 %1243, %v1418_v10   ;;  %147 = vperm.xlu1 %1242, %v1421_v11   ;;  %2596 = vst [vmem:[#allocation18_spill] sm:$0xff] %v1473_v29  ;;  %v1482_v31 = vsel %vm227_vm2, 1, %v1364_v3  ;;  %v1485_v32 = vsel %vm226_vm3, 1, %v1364_v3  ;;  %v1488_v33 = vsel %vm225_vm4, 1, %v1364_v3  ;;  %vm230_vm5 = vcmp.eq.f32.partialorder %v70_v19, 0.0  ;;  %s1184_s5 = sld [smem:[#allocation6 + $0x18]] }
  0x1e   :  { %141 = vperm.xlu0 %1241, %v1424_v12   ;;  %vm229_vm6 = vcmp.eq.f32.partialorder %v69_v20, 0.0  ;;  %vm228_vm7 = vcmp.eq.f32.partialorder %v1440_v21, 0.0  ;;  %v1495_v34 = vsel %vm230_vm5, 1, %v1364_v3  ;;  %s1524_s6 = sld [smem:[#allocation6 + $0xe]]  ;;  %v89_v40 = vstv %s1186_s1 }
  0x1f   :  { %v1498_v35 = vsel %vm229_vm6, 1, %v1364_v3  ;;  %v1501_v36 = vsel %vm228_vm7, 1, %v1364_v3  ;;  %s1526_s7 = sld [smem:[#allocation6 + $0x26]]  ;;  %v93_v41 = vstv %s1188_s27  ;;  %v58_v44 = vld [vmem:[#allocation2] ss:$4 sm:$0x3]  ;;  %v91_v47 = vstv %s1515_s2 }
  0x20   :  { %s1528_s8 = sld [smem:[#allocation6 + $0xc]]  ;;  %v103_v42 = vstv %s1190_s29  ;;  %v95_v48 = vstv %s1518_s28  ;;  %v90_v49 = vmul.f32 %v89_v40, %v58_v44  ;;  %v94_v50 = vmul.f32 %v93_v41, %v58_v44 }
  0x21   :  { %s1531_s9 = sld [smem:[#allocation6 + $0x24]]  ;;  %v107_v43 = vstv %s1192_s30  ;;  %v104_v51 = vmul.f32 %v103_v42, %v58_v44 }
  0x22   :  { %v75_v45 = vstv %s71_s4  ;;  %v108_v52 = vmul.f32 %v107_v43, %v58_v44  ;;  %v92_v60 = vadd.f32 %v91_v47, %v90_v49  ;;  %v96_v61 = vadd.f32 %v95_v48, %v94_v50  ;;  %s1651_s10 = sld [smem:[#allocation6 + $0x4]] }
  0x23   :  { %v79_v46 = vstv %s1184_s5  ;;  %v76_v55 = vmul.f32 %v75_v45, %v58_v44  ;;  %s1653_s11 = sld [smem:[#allocation6 + $0x10]] }
  0x24   :  { %v105_v53 = vstv %s1524_s6  ;;  %v80_v56 = vmul.f32 %v79_v46, %v58_v44  ;;  %v97_v2 = vmin.f32 %v92_v60, %v96_v61  ;;  %s1657_s12 = sld [smem:[#allocation6 + $0x1c]] }
  0x25   :  { %162 = vperm.xlu2 %1243, %v1430_v16   ;;  %159 = vperm.xlu1 %1242, %v1433_v17   ;;  %v109_v54 = vstv %s1526_s7  ;;  %v106_v62 = vadd.f32 %v105_v53, %v104_v51  ;;  %v1366_v51 = vmov 2   ;;  %s1659_s13 = sld [smem:[#allocation6 + $0x5]] }
  0x26   :  { %156 = vperm.xlu0 %1241, %v1436_v18   ;;  %v77_v57 = vstv %s1528_s8  ;;  %v110_v63 = vadd.f32 %v109_v54, %v108_v52  ;;  %v98_v13 = vmax.f32 %v97_v2, 0.0  ;;  %s1661_s14 = sld [smem:[#allocation6 + $0x1d]] }
  0x27   :  { %v81_v58 = vstv %s1531_s9  ;;  %v78_v0 = vadd.f32 %v77_v57, %v76_v55  ;;  %s1671_s15 = sld [smem:[#allocation6 + $0x28]] }
  0x28   :  { %v82_v1 = vadd.f32 %v81_v58, %v80_v56  ;;  %v111_v3 = vmin.f32 %v106_v62, %v110_v63  ;;  %v1551_v20 = vperm.slane %v98_v13, 0  ;;  %s1684_s16 = sld [smem:[#allocation6 + $0x11]] }
  0x29   :  { %s1692_s17 = sld [smem:[#allocation6 + $0x3]] }
  0x2a   :  { %v83_v7 = vmin.f32 %v78_v0, %v82_v1  ;;  %v112_v14 = vmax.f32 %v111_v3, 0.0  ;;  %s1694_s18 = sld [smem:[#allocation6 + $0x1b]] }
  0x2b   :  { %s1697_s19 = sld [smem:[#allocation6 + $0x29]] }
  0x2c   :  { %v84_v19 = vmax.f32 %v83_v7, 0.0  ;;  %v1555_v40 = vperm.slane %v112_v14, 0  ;;  %v1557_v41 = vperm.slane %v112_v14, 1  ;;  %s1702_s20 = sld [smem:[#allocation6 + $0xf]] }
  0x2d   :  { %171 = vperm.xlu2 %1243, %v1445_v22   ;;  %168 = vperm.xlu1 %1242, %v1448_v23   ;;  %s1707_s21 = sld [smem:[#allocation6 + $0x27]] }
  0x2e   :  { %165 = vperm.xlu0 %1241, %v1451_v24   ;;  %v1559_v42 = vperm.slane %v84_v19, 0  ;;  %v1561_v43 = vperm.slane %v84_v19, 1  ;;  %s1884_s22 = sld [smem:[#allocation6 + $0x7]] }
  0x2f   :  { %s1896_s23 = sld [smem:[#allocation6 + $0x1f]] }
  0x30   :  { %s1908_s24 = sld [smem:[#allocation6 + $0x8]] }
  0x31   :  { %s1914_s25 = sld [smem:[#allocation6 + $0x20]] }
  0x32   :  { %s1918_s0 = sld [smem:[#allocation6 + $0x13]] }
  0x33   :  { %s1928_s26 = sld [smem:[#allocation6 + $0x6]] }
  0x34   :  { %s1936_s1 = sld [smem:[#allocation6 + $0x1e]] }
  0x35   :  { %250 = vperm.xlu2 %1243, %v1457_v25   ;;  %247 = vperm.xlu1 %1242, %v1460_v26   ;;  %s1950_s2 = sld [smem:[#allocation6 + $0x2b]] }
  0x36   :  { %244 = vperm.xlu0 %1241, %v1463_v27   ;;  %s1960_s27 = sld [smem:[#allocation6 + $0x14]] }
  0x37   :  { %s1964_s28 = sld [smem:[#allocation6 + $0x2c]] }
  0x38   :  { %s1969_s29 = sld [smem:[#allocation6 + $0x12]] }
  0x39   :  { %s1971_s30 = sld [smem:[#allocation6 + $0x2a]] }
  0x3a   :  { %s2222_s4 = sld [smem:[#allocation6 + $0xa]] }
  0x3b   :  { %s2226_s5 = sld [smem:[#allocation6 + $0x16]] }
  0x3c   :  { %s2228_s6 = sld [smem:[#allocation6 + $0x22]] }
  0x3d   :  { %259 = vperm.xlu2 %1243, %v1470_v28   ;;  %256 = vperm.xlu1 %1242, %v1473_v29   ;;  %s2230_s7 = sld [smem:[#allocation6 + $0x2e]] }
  0x3e   :  { %253 = vperm.xlu0 %1241, %v1476_v30   ;;  %s2240_s8 = sld [smem:[#allocation6 + $0xb]] }
  0x3f   :  { %s2248_s9 = sld [smem:[#allocation6 + $0x23]] }
  0x45   :  { %268 = vperm.xlu2 %1243, %v1482_v31   ;;  %265 = vperm.xlu1 %1242, %v1485_v32  }
  0x46   :  { %262 = vperm.xlu0 %1241, %v1488_v33  }
  0x4d   :  { %277 = vperm.xlu2 %1243, %v1495_v34   ;;  %274 = vperm.xlu1 %1242, %v1498_v35  }
  0x4e   :  { %271 = vperm.xlu0 %1241, %v1501_v36  }
  0x55   :  { %1246 = vset.pattern.permute.xlu2 %v1365_v37  ;;  %1245 = vset.pattern.permute.xlu1 %v1365_v37 }
  0x56   :  { %1244 = vset.pattern.permute.xlu0 %v1365_v37  ;;  %371 = vperm.xlu2 %1246, %v1409_v5   ;;  %v1553_v37 = vperm.slane %v98_v13, 1 }
  0x57   :  { %368 = vperm.xlu1 %1245, %v1424_v12   ;;  %365 = vperm.xlu0 %1244, %v1412_v6  }
  0x5e   :  { %377 = vperm.xlu2 %1246, %v1406_v4  }
  0x5f   :  { %374 = vperm.xlu1 %1245, %v1421_v11   ;;  %380 = vperm.xlu0 %1244, %v1418_v10  }
  0x66   :  { %386 = vperm.xlu2 %1246, %v1433_v17  }
  0x67   :  { %383 = vperm.xlu1 %1245, %v1436_v18   ;;  %389 = vperm.xlu0 %1244, %v1430_v16  }
  0x6e   :  { %395 = vperm.xlu2 %1246, %v1448_v23  }
  0x6f   :  { %392 = vperm.xlu1 %1245, %v1451_v24   ;;  %398 = vperm.xlu0 %1244, %v1445_v22   ;;  %v1522_v38 = vpop.permute.xlu2 %150 }
  0x70   :  { %vm177_vm4 = vcmp.eq.s32.totalorder %v1522_v38, 1 }
  0x76   :  { %450 = vperm.xlu2 %1246, %v1460_v26  }
  0x77   :  { %447 = vperm.xlu1 %1245, %v1463_v27   ;;  %453 = vperm.xlu0 %1244, %v1457_v25   ;;  %v1535_v39 = vpop.permute.xlu2 %153 }
  0x78   :  { %vm178_vm10 = vcmp.eq.s32.totalorder %v1535_v39, 1 }
  0x79   :  { %v205_v54 = vsel %vm178_vm10, %v1551_v20, %v1555_v40  ;;  %v206_v55 = vsel %vm178_vm10, %v1553_v37, %v1557_v41 }
  0x7e   :  { %459 = vperm.xlu2 %1246, %v1473_v29  }
  0x7f   :  { %456 = vperm.xlu1 %1245, %v1476_v30   ;;  %462 = vperm.xlu0 %1244, %v1470_v28   ;;  %v163_v59 = vpop.permute.xlu2 %162 }
  0x80   :  { %vm181_vm12 = vcmp.eq.s32.totalorder %v163_v59, 1 }
  0x81   :  { %v211_v61 = vsel %vm181_vm12, %v1551_v20, %v1555_v40  ;;  %v212_v62 = vsel %vm181_vm12, %v1553_v37, %v1557_v41 }
  0x86   :  { %468 = vperm.xlu2 %1246, %v1485_v32  }
  0x87   :  { %465 = vperm.xlu1 %1245, %v1488_v33   ;;  %471 = vperm.xlu0 %1244, %v1482_v31   ;;  %v172_v8 = vpop.permute.xlu2 %171  ;;  %v145_v9 = vpop.permute.xlu1 %144 }
  0x88   :  { %v1549_v15 = vpop.permute.xlu0 %138  ;;  %vm175_vm8 = vcmp.eq.s32.totalorder %v145_v9, 1  ;;  %vm184_vm14 = vcmp.eq.s32.totalorder %v172_v8, 1 }
  0x89   :  { %v199_v46 = vsel %vm175_vm8, %v1551_v20, %v1555_v40  ;;  %v200_v47 = vsel %vm175_vm8, %v1553_v37, %v1557_v41  ;;  %v217_v1 = vsel %vm184_vm14, %v1551_v20, %v1555_v40  ;;  %v218_v2 = vsel %vm184_vm14, %v1553_v37, %v1557_v41 }
  0x8a   :  { %vm173_vm0 = vcmp.eq.s32.totalorder %v1549_v15, 1 }
  0x8e   :  { %477 = vperm.xlu2 %1246, %v1498_v35  }
  0x8f   :  { %474 = vperm.xlu1 %1245, %v1501_v36   ;;  %480 = vperm.xlu0 %1244, %v1495_v34   ;;  %v251_v44 = vpop.permute.xlu2 %250  ;;  %v1566_v45 = vpop.permute.xlu1 %147 }
  0x90   :  { %vm281_vm9 = vcmp.eq.s32.totalorder %v251_v44, 1  ;;  %v142_v48 = vpop.permute.xlu0 %141  ;;  %vm176_vm5 = vcmp.eq.s32.totalorder %v1566_v45, 1 }
  0x91   :  { %v1573_v49 = vsel %vm281_vm9, %v1559_v42, %v199_v46  ;;  %v1576_v50 = vsel %vm281_vm9, %v1561_v43, %v200_v47  ;;  %vm174_vm15 = vcmp.eq.s32.totalorder %v142_v48, 1  ;;  %v195_v47 = vsel %vm173_vm0, %v1551_v20, %v1555_v40 }
  0x92   :  { %2597 = vst [vmem:[#allocation19_spill] sm:$0xff] %v1576_v50  ;;  %v197_v9 = vsel %vm174_vm15, %v1551_v20, %v1555_v40  ;;  %v198_v13 = vsel %vm174_vm15, %v1553_v37, %v1557_v41  ;;  %v196_v48 = vsel %vm173_vm0, %v1553_v37, %v1557_v41  ;;  %v559_v50 = vstv %s1971_s30 }
  0x96   :  { %1248 = vset.pattern.permute.xlu2 %v1366_v51 }
  0x97   :  { %1247 = vset.pattern.permute.xlu1 %v1366_v51  ;;  %1249 = vset.pattern.permute.xlu0 %v1366_v51  ;;  %v260_v52 = vpop.permute.xlu2 %259  ;;  %v1579_v53 = vpop.permute.xlu1 %159 }
  0x98   :  { %vm284_vm11 = vcmp.eq.s32.totalorder %v260_v52, 1  ;;  %595 = vperm.xlu2 %1248, %v1424_v12   ;;  %592 = vperm.xlu1 %1247, %v1412_v6   ;;  %v1587_v56 = vpop.permute.xlu0 %156  ;;  %vm180_vm8 = vcmp.eq.s32.totalorder %v1579_v53, 1 }
  0x99   :  { %v1590_v39 = vsel %vm284_vm11, %v1559_v42, %v205_v54  ;;  %v1593_v57 = vsel %vm284_vm11, %v1561_v43, %v206_v55  ;;  %598 = vperm.xlu0 %1249, %v1409_v5   ;;  %v203_v54 = vsel %vm177_vm4, %v1551_v20, %v1555_v40  ;;  %v204_v55 = vsel %vm177_vm4, %v1553_v37, %v1557_v41 }
  0x9a   :  { %2598 = vst [vmem:[#allocation20_spill] sm:$0xff] %v1590_v39  ;;  %vm179_vm9 = vcmp.eq.s32.totalorder %v1587_v56, 1  ;;  %v332_v39 = vstv %s1707_s21 }
  0x9b   :  { %2599 = vst [vmem:[#allocation21_spill] sm:$0xff] %v1593_v57  ;;  %v207_v53 = vsel %vm179_vm9, %v1551_v20, %v1555_v40 }
  0x9f   :  { %v269_v58 = vpop.permute.xlu2 %268  ;;  %v1596_v60 = vpop.permute.xlu1 %168 }
  0xa0   :  { %vm287_vm13 = vcmp.eq.s32.totalorder %v269_v58, 1  ;;  %604 = vperm.xlu2 %1248, %v1406_v4   ;;  %601 = vperm.xlu1 %1247, %v1421_v11   ;;  %v1604_v63 = vpop.permute.xlu0 %165  ;;  %v201_v58 = vsel %vm176_vm5, %v1551_v20, %v1555_v40  ;;  %vm183_vm12 = vcmp.eq.s32.totalorder %v1596_v60, 1 }
  0xa1   :  { %v1607_v0 = vsel %vm287_vm13, %v1559_v42, %v211_v61  ;;  %v1610_v59 = vsel %vm287_vm13, %v1561_v43, %v212_v62  ;;  %613 = vperm.xlu0 %1249, %v1433_v17   ;;  %v202_v61 = vsel %vm176_vm5, %v1553_v37, %v1557_v41  ;;  %vm182_vm13 = vcmp.eq.s32.totalorder %v1604_v63, 1 }
  0xa2   :  { %2600 = vst [vmem:[#allocation22_spill] sm:$0xff] %v1607_v0  ;;  %v213_v60 = vsel %vm182_vm13, %v1551_v20, %v1555_v40 }
  0xa3   :  { %2601 = vst [vmem:[#allocation23_spill] sm:$0xff] %v1610_v59 }
  0xa7   :  { %v278_v3 = vpop.permute.xlu2 %277  ;;  %v248_v7 = vpop.permute.xlu1 %247 }
  0xa8   :  { %vm290_vm1 = vcmp.eq.s32.totalorder %v278_v3, 1  ;;  %vm280_vm2 = vcmp.eq.s32.totalorder %v248_v7, 1  ;;  %610 = vperm.xlu2 %1248, %v1436_v18   ;;  %607 = vperm.xlu1 %1247, %v1418_v10   ;;  %v245_v8 = vpop.permute.xlu0 %244  ;;  %v321_v7 = vld [vmem:[#allocation2 + $0x1] ss:$4 sm:$0x3] }
  0xa9   :  { %v1625_v14 = vsel %vm290_vm1, %v1559_v42, %v217_v1  ;;  %v1628_v19 = vsel %vm290_vm1, %v1561_v43, %v218_v2  ;;  %v1631_v44 = vsel %vm280_vm2, %v1559_v42, %v197_v9  ;;  %v1634_v46 = vsel %vm280_vm2, %v1561_v43, %v198_v13  ;;  %622 = vperm.xlu0 %1249, %v1448_v23  }
  0xaa   :  { %2602 = vst [vmem:[#allocation24_spill] sm:$0xff] %v1625_v14  ;;  %vm279_vm3 = vcmp.eq.s32.totalorder %v245_v8, 1  ;;  %v340_v9 = vstv %s1651_s10  ;;  %v342_v13 = vstv %s1653_s11  ;;  %v346_v14 = vstv %s1671_s15  ;;  %s2264_s10 = sld [smem:[#allocation6 + $0x9]] }
  0xab   :  { %2603 = vst [vmem:[#allocation25_spill] sm:$0xff] %v1628_v19  ;;  %v1646_v51 = vsel %vm279_vm3, %v1559_v42, %v195_v47  ;;  %v1649_v52 = vsel %vm279_vm3, %v1561_v43, %v196_v48  ;;  %v341_v8 = vmul.f32 %v340_v9, %v321_v7  ;;  %v344_v47 = vstv %s1657_s12  ;;  %s2276_s11 = sld [smem:[#allocation6 + $0x21]] }
  0xac   :  { %v354_v48 = vstv %s1659_s13  ;;  %v208_v9 = vsel %vm179_vm9, %v1553_v37, %v1557_v41  ;;  %v345_v19 = vmul.f32 %v344_v47, %v321_v7  ;;  %v330_v23 = vstv %s1694_s18  ;;  %s2278_s12 = sld [smem:[#allocation6 + $0x17]] }
  0xad   :  { %v355_v56 = vmul.f32 %v354_v48, %v321_v7  ;;  %v343_v47 = vadd.f32 %v342_v13, %v341_v8  ;;  %v215_v48 = vsel %vm183_vm12, %v1551_v20, %v1555_v40  ;;  %s2281_s13 = sld [smem:[#allocation6 + $0x2f]] }
  0xae   :  { %s2285_s15 = sld [smem:[#allocation6 + $0x2d]] }
  0xaf   :  { %v257_v15 = vpop.permute.xlu1 %256 }
  0xb0   :  { %vm283_vm6 = vcmp.eq.s32.totalorder %v257_v15, 1  ;;  %619 = vperm.xlu2 %1248, %v1451_v24   ;;  %616 = vperm.xlu1 %1247, %v1430_v16   ;;  %v254_v38 = vpop.permute.xlu0 %253  ;;  %v1673_v45 = vpop.permute.xlu2 %371  ;;  %v358_v15 = vstv %s1661_s14  ;;  %s2283_s14 = sld [smem:[#allocation6 + $0x15]] }
  0xb1   :  { %v1678_v62 = vsel %vm283_vm6, %v1559_v42, %v203_v54  ;;  %v1681_v1 = vsel %vm283_vm6, %v1561_v43, %v204_v55  ;;  %677 = vperm.xlu0 %1249, %v1460_v26   ;;  %vm282_vm7 = vcmp.eq.s32.totalorder %v254_v38, 1  ;;  %v209_v55 = vsel %vm180_vm8, %v1551_v20, %v1555_v40 }
  0xb2   :  { %v1687_v2 = vsel %vm282_vm7, %v1559_v42, %v201_v58  ;;  %v1690_v3 = vsel %vm282_vm7, %v1561_v43, %v202_v61  ;;  %v210_v58 = vsel %vm180_vm8, %v1553_v37, %v1557_v41  ;;  %v359_v0 = vmul.f32 %v358_v15, %v321_v7 }
  0xb3   :  { %v216_v15 = vsel %vm183_vm12, %v1553_v37, %v1557_v41  ;;  %vm402_vm6 = vcmp.eq.s32.totalorder %v1673_v45, 1 }
  0xb7   :  { %v266_v54 = vpop.permute.xlu1 %265 }
  0xb8   :  { %vm286_vm10 = vcmp.eq.s32.totalorder %v266_v54, 1  ;;  %674 = vperm.xlu2 %1248, %v1463_v27   ;;  %625 = vperm.xlu1 %1247, %v1445_v22   ;;  %v263_v38 = vpop.permute.xlu0 %262  ;;  %v1719_v61 = vpop.permute.xlu2 %377  ;;  %v356_v22 = vstv %s1684_s16  ;;  %s1369_s16 = smov [#allocation9]  }
  0xb9   :  { %v1726_v21 = vsel %vm286_vm10, %v1559_v42, %v209_v55  ;;  %v1729_v54 = vsel %vm286_vm10, %v1561_v43, %v210_v58  ;;  %686 = vperm.xlu0 %1249, %v1473_v29   ;;  %vm285_vm11 = vcmp.eq.s32.totalorder %v263_v38, 1  ;;  %v326_v55 = vstv %s1692_s17  ;;  %s1169_s17 = sshll.u32 %s1369_s16, 4  ;;  %s1170_s17 = int_to_ptr.vmem [resolvable:$true] %s1169_s17 }
  0xba   :  { %2604 = vst [vmem:[#allocation26_spill] sm:$0xff] %v1726_v21  ;;  %v1734_v26 = vsel %vm285_vm11, %v1559_v42, %v207_v53  ;;  %v1737_v59 = vsel %vm285_vm11, %v1561_v43, %v208_v9  ;;  %v360_v58 = vstv %s1697_s19  ;;  %v347_v38 = vadd.f32 %v346_v14, %v345_v19 }
  0xbb   :  { %2605 = vst [vmem:[#allocation27_spill] sm:$0xff] %v1729_v54  ;;  %v327_v29 = vmul.f32 %v326_v55, %v321_v7  ;;  %v331_v53 = vmul.f32 %v330_v23, %v321_v7  ;;  %v361_v57 = vadd.f32 %v360_v58, %v359_v0  ;;  %v214_v0 = vsel %vm182_vm13, %v1553_v37, %v1557_v41 }
  0xbc   :  { %2606 = vst [vmem:[#allocation28_spill] sm:$0xff] %v1734_v26  ;;  %v357_v26 = vadd.f32 %v356_v22, %v355_v56  ;;  %v348_v8 = vmin.f32 %v343_v47, %v347_v38  ;;  %vm404_vm2 = vcmp.eq.s32.totalorder %v1719_v61, 1  ;;  %v573_v54 = vstv %s1950_s2 }
  0xbd   :  { %2607 = vst [vmem:[#allocation29_spill] sm:$0xff] %v1737_v59  ;;  %v328_v59 = vstv %s1702_s20  ;;  %v333_v13 = vadd.f32 %v332_v39, %v331_v53  ;;  %s1171_s20 = sshll.u32 %s2561_s3, 4  ;;  %s1172_s20 = int_to_ptr.hbm [resolvable:$true] %s1171_s20 }
  0xbe   :  { %v329_v7 = vadd.f32 %v328_v59, %v327_v29  ;;  %v362_v63 = vmin.f32 %v357_v26, %v361_v57  ;;  %v349_v56 = vmax.f32 %v348_v8, 0.0 }
  0xbf   :  { %v275_v9 = vpop.permute.xlu1 %274 }
  0xc0   :  { %vm289_vm14 = vcmp.eq.s32.totalorder %v275_v9, 1  ;;  %683 = vperm.xlu2 %1248, %v1476_v30   ;;  %680 = vperm.xlu1 %1247, %v1457_v25   ;;  %v272_v22 = vpop.permute.xlu0 %271  ;;  %v1757_v23 = vpop.permute.xlu2 %386  ;;  %v334_v37 = vmin.f32 %v329_v7, %v333_v13  ;;  %v363_v55 = vmax.f32 %v362_v63, 0.0  ;;  %v1783_v9 = vperm.slane %v349_v56, 0  ;;  %v548_v13 = vld [vmem:[#allocation2 + $0x2] ss:$4 sm:$0x3] }
  0xc1   :  { %v1764_v14 = vsel %vm289_vm14, %v1559_v42, %v215_v48  ;;  %v1767_v19 = vsel %vm289_vm14, %v1561_v43, %v216_v15  ;;  %695 = vperm.xlu0 %1249, %v1485_v32   ;;  %vm288_vm15 = vcmp.eq.s32.totalorder %v272_v22, 1  ;;  %v1785_v29 = vperm.slane %v349_v56, 1 }
  0xc2   :  { %2608 = vst [vmem:[#allocation30_spill] sm:$0xff] %v1764_v14  ;;  %v1771_v20 = vsel %vm288_vm15, %v1559_v42, %v213_v60  ;;  %v1774_v40 = vsel %vm288_vm15, %v1561_v43, %v214_v0  ;;  %v335_v43 = vmax.f32 %v334_v37, 0.0  ;;  %v1787_v26 = vperm.slane %v363_v55, 0 }
  0xc3   :  { %2609 = vst [vmem:[#allocation31_spill] sm:$0xff] %v1767_v19  ;;  %v1789_v39 = vperm.slane %v363_v55, 1  ;;  %v1367_v48 = vmov 3   ;;  %vm407_vm4 = vcmp.eq.s32.totalorder %v1757_v23, 1  ;;  %v585_v7 = vstv %s1914_s25  ;;  %v2620_v19 = vld [vmem:[#allocation15_spill] sm:$0xff] }
  0xc4   :  { %v1791_v57 = vperm.slane %v335_v43, 0  ;;  %v1793_v59 = vperm.slane %v335_v43, 1  ;;  %v430_v63 = vsel %vm404_vm2, %v1783_v9, %v1787_v26 }
  0xc5   :  { %v431_v37 = vsel %vm404_vm2, %v1785_v29, %v1789_v39 }
  0xc8   :  { %692 = vperm.xlu2 %1248, %v1488_v33   ;;  %689 = vperm.xlu1 %1247, %v1470_v28   ;;  %v1778_v41 = vpop.permute.xlu2 %395 }
  0xc9   :  { %704 = vperm.xlu0 %1249, %v1498_v35   ;;  %v369_v42 = vpop.permute.xlu1 %368  ;;  %v1781_v58 = vpop.permute.xlu0 %365  ;;  %vm410_vm7 = vcmp.eq.s32.totalorder %v1778_v41, 1 }
  0xca   :  { %vm401_vm0 = vcmp.eq.s32.totalorder %v369_v42, 1  ;;  %vm400_vm8 = vcmp.eq.s32.totalorder %v1781_v58, 1 }
  0xcb   :  { %v424_v38 = vsel %vm401_vm0, %v1783_v9, %v1787_v26  ;;  %v425_v53 = vsel %vm401_vm0, %v1785_v29, %v1789_v39  ;;  %v422_v45 = vsel %vm400_vm8, %v1783_v9, %v1787_v26  ;;  %v423_v41 = vsel %vm400_vm8, %v1785_v29, %v1789_v39 }
  0xd0   :  { %701 = vperm.xlu2 %1248, %v1501_v36   ;;  %698 = vperm.xlu1 %1247, %v1482_v31   ;;  %v451_v47 = vpop.permute.xlu2 %450 }
  0xd1   :  { %1251 = vset.pattern.permute.xlu0 %v1367_v48  ;;  %vm483_vm1 = vcmp.eq.s32.totalorder %v451_v47, 1  ;;  %v1801_v15 = vpop.permute.xlu1 %374  ;;  %v1803_v60 = vpop.permute.xlu0 %380  ;;  %v436_v47 = vsel %vm407_vm4, %v1783_v9, %v1787_v26 }
  0xd2   :  { %v1806_v22 = vsel %vm483_vm1, %v1791_v57, %v424_v38  ;;  %v1809_v0 = vsel %vm483_vm1, %v1793_v59, %v425_v53  ;;  %822 = vperm.xlu0 %1251, %v1424_v12   ;;  %v437_v38 = vsel %vm407_vm4, %v1785_v29, %v1789_v39  ;;  %vm403_vm12 = vcmp.eq.s32.totalorder %v1801_v15, 1 }
  0xd3   :  { %vm405_vm13 = vcmp.eq.s32.totalorder %v1803_v60, 1  ;;  %v567_v60 = vstv %s1884_s22 }
  0xd4   :  { %v433_v15 = vsel %vm405_vm13, %v1785_v29, %v1789_v39 }
  0xd8   :  { %1250 = vset.pattern.permute.xlu2 %v1367_v48  ;;  %707 = vperm.xlu1 %1247, %v1495_v34   ;;  %v460_v8 = vpop.permute.xlu2 %459 }
  0xd9   :  { %vm486_vm3 = vcmp.eq.s32.totalorder %v460_v8, 1  ;;  %v1822_v12 = vpop.permute.xlu1 %383  ;;  %819 = vperm.xlu2 %1250, %v1412_v6   ;;  %v1825_v56 = vpop.permute.xlu0 %389 }
  0xda   :  { %v1828_v55 = vsel %vm486_vm3, %v1791_v57, %v430_v63  ;;  %v1831_v61 = vsel %vm486_vm3, %v1793_v59, %v431_v37  ;;  %837 = vperm.xlu0 %1251, %v1436_v18   ;;  %vm406_vm0 = vcmp.eq.s32.totalorder %v1822_v12, 1  ;;  %vm408_vm1 = vcmp.eq.s32.totalorder %v1825_v56, 1 }
  0xdb   :  { %v434_v42 = vsel %vm406_vm0, %v1783_v9, %v1787_v26  ;;  %v439_v56 = vsel %vm408_vm1, %v1785_v29, %v1789_v39 }
  0xe0   :  { %1252 = vset.pattern.permute.xlu1 %v1367_v48  ;;  %v469_v6 = vpop.permute.xlu2 %468 }
  0xe1   :  { %vm489_vm5 = vcmp.eq.s32.totalorder %v469_v6, 1  ;;  %v1843_v53 = vpop.permute.xlu1 %392  ;;  %828 = vperm.xlu2 %1250, %v1421_v11   ;;  %825 = vperm.xlu1 %1252, %v1409_v5   ;;  %v1847_v18 = vpop.permute.xlu0 %398  ;;  %v426_v5 = vsel %vm402_vm6, %v1783_v9, %v1787_v26  ;;  %v427_v11 = vsel %vm402_vm6, %v1785_v29, %v1789_v39  ;;  %v443_v6 = vsel %vm410_vm7, %v1785_v29, %v1789_v39 }
  0xe2   :  { %v1850_v8 = vsel %vm489_vm5, %v1791_v57, %v436_v47  ;;  %v1853_v23 = vsel %vm489_vm5, %v1793_v59, %v437_v38  ;;  %846 = vperm.xlu0 %1251, %v1451_v24   ;;  %v442_v24 = vsel %vm410_vm7, %v1783_v9, %v1787_v26  ;;  %vm409_vm4 = vcmp.eq.s32.totalorder %v1843_v53, 1 }
  0xe3   :  { %2610 = vst [vmem:[#allocation32_spill] sm:$0xff] %v1850_v8  ;;  %v587_v8 = vstv %s1964_s28  ;;  %vm411_vm5 = vcmp.eq.s32.totalorder %v1847_v18, 1 }
  0xe4   :  { %2611 = vst [vmem:[#allocation33_spill] sm:$0xff] %v1853_v23  ;;  %v2626_v23 = vld [vmem:[#allocation23_spill] sm:$0xff]  ;;  %v444_v53 = vsel %vm411_vm5, %v1783_v9, %v1787_v26  ;;  %v445_v18 = vsel %vm411_vm5, %v1785_v29, %v1789_v39 }
  0xe8   :  { %v478_v37 = vpop.permute.xlu2 %477 }
  0xe9   :  { %vm492_vm9 = vcmp.eq.s32.totalorder %v478_v37, 1  ;;  %v448_v58 = vpop.permute.xlu1 %447  ;;  %834 = vperm.xlu2 %1250, %v1418_v10   ;;  %831 = vperm.xlu1 %1252, %v1406_v4   ;;  %v454_v47 = vpop.permute.xlu0 %453  ;;  %v432_v10 = vsel %vm405_vm13, %v1783_v9, %v1787_v26 }
  0xea   :  { %v1878_v38 = vsel %vm492_vm9, %v1791_v57, %v442_v24  ;;  %v1881_v63 = vsel %vm492_vm9, %v1793_v59, %v443_v6  ;;  %vm482_vm10 = vcmp.eq.s32.totalorder %v448_v58, 1  ;;  %901 = vperm.xlu0 %1251, %v1463_v27   ;;  %vm484_vm11 = vcmp.eq.s32.totalorder %v454_v47, 1 }
  0xeb   :  { %2612 = vst [vmem:[#allocation34_spill] sm:$0xff] %v1878_v38  ;;  %v1891_v4 = vsel %vm482_vm10, %v1791_v57, %v422_v45  ;;  %v1894_v24 = vsel %vm482_vm10, %v1793_v59, %v423_v41  ;;  %v1903_v58 = vsel %vm484_vm11, %v1791_v57, %v426_v5  ;;  %v1906_v47 = vsel %vm484_vm11, %v1793_v59, %v427_v11  ;;  %v2621_v38 = vld [vmem:[#allocation16_spill] sm:$0xff] }
  0xec   :  { %2613 = vst [vmem:[#allocation35_spill] sm:$0xff] %v1881_v63  ;;  %v428_v5 = vsel %vm403_vm12, %v1783_v9, %v1787_v26  ;;  %v429_v11 = vsel %vm403_vm12, %v1785_v29, %v1789_v39  ;;  %v435_v6 = vsel %vm406_vm0, %v1785_v29, %v1789_v39  ;;  %v438_v27 = vsel %vm408_vm1, %v1783_v9, %v1787_v26 }
  0xed   :  { %2614 = vst [vmem:[#allocation36_spill] sm:$0xff] %v1903_v58 }
  0xee   :  { %2615 = vst [vmem:[#allocation37_spill] sm:$0xff] %v1906_v47 }
  0xf1   :  { %v457_v37 = vpop.permute.xlu1 %456  ;;  %843 = vperm.xlu2 %1250, %v1430_v16   ;;  %840 = vperm.xlu1 %1252, %v1433_v17   ;;  %v463_v48 = vpop.permute.xlu0 %462 }
  0xf2   :  { %vm485_vm14 = vcmp.eq.s32.totalorder %v457_v37, 1  ;;  %910 = vperm.xlu0 %1251, %v1476_v30   ;;  %vm487_vm15 = vcmp.eq.s32.totalorder %v463_v48, 1  ;;  %v1934_v41 = vpop.permute.xlu2 %595  ;;  %v568_v37 = vmul.f32 %v567_v60, %v548_v13  ;;  %v586_v48 = vmul.f32 %v585_v7, %v548_v13 }
  0xf3   :  { %v1939_v16 = vsel %vm485_vm14, %v1791_v57, %v428_v5  ;;  %v1942_v17 = vsel %vm485_vm14, %v1793_v59, %v429_v11  ;;  %v1945_v45 = vsel %vm487_vm15, %v1791_v57, %v432_v10  ;;  %v1948_v30 = vsel %vm487_vm15, %v1793_v59, %v433_v15  ;;  %v2624_v11 = vld [vmem:[#allocation29_spill] sm:$0xff] }
  0xf4   :  { %2616 = vst [vmem:[#allocation38_spill] sm:$0xff] %v1945_v45  ;;  %v571_v10 = vstv %s1896_s23  ;;  %v581_v15 = vstv %s1908_s24  ;;  %v569_v60 = vstv %s1918_s0  ;;  %v440_v45 = vsel %vm409_vm4, %v1783_v9, %v1787_v26 }
  0xf5   :  { %2617 = vst [vmem:[#allocation39_spill] sm:$0xff] %v1948_v30  ;;  %v572_v43 = vmul.f32 %v571_v10, %v548_v13  ;;  %v582_v12 = vmul.f32 %v581_v15, %v548_v13  ;;  %v553_v10 = vstv %s1928_s26  ;;  %v557_v15 = vstv %s1936_s1 }
  0xf6   :  { %v558_v21 = vmul.f32 %v557_v15, %v548_v13  ;;  %v570_v47 = vadd.f32 %v569_v60, %v568_v37  ;;  %vm628_vm13 = vcmp.eq.s32.totalorder %v1934_v41, 1 }
  0xf7   :  { %v574_v58 = vadd.f32 %v573_v54, %v572_v43 }
  0xf9   :  { %v466_v63 = vpop.permute.xlu1 %465  ;;  %852 = vperm.xlu2 %1250, %v2620_v19   ;;  %849 = vperm.xlu1 %1252, %v2621_v38   ;;  %v472_v14 = vpop.permute.xlu0 %471 }
  0xfa   :  { %vm488_vm2 = vcmp.eq.s32.totalorder %v466_v63, 1  ;;  %919 = vperm.xlu0 %1251, %v1488_v33   ;;  %vm490_vm3 = vcmp.eq.s32.totalorder %v472_v14, 1  ;;  %v1985_v7 = vpop.permute.xlu2 %604  ;;  %v2623_v33 = vld [vmem:[#allocation28_spill] sm:$0xff]  ;;  %v555_v14 = vstv %s1969_s29 }
  0xfb   :  { %v1990_v30 = vsel %vm488_vm2, %v1791_v57, %v434_v42  ;;  %v1993_v19 = vsel %vm488_vm2, %v1793_v59, %v435_v6  ;;  %v1996_v38 = vsel %vm490_vm3, %v1791_v57, %v438_v27  ;;  %v1999_v63 = vsel %vm490_vm3, %v1793_v59, %v439_v56  ;;  %v2625_v42 = vld [vmem:[#allocation22_spill] sm:$0xff] }
  0xfc   :  { %2622 = vst [vmem:[#allocation15_spill] sm:$0xff] %v1996_v38  ;;  %v583_v27 = vstv %s1960_s27  ;;  %v554_v56 = vmul.f32 %v553_v10, %v548_v13  ;;  %v588_v38 = vadd.f32 %v587_v8, %v586_v48  ;;  %v441_v6 = vsel %vm409_vm4, %v1785_v29, %v1789_v39  ;;  %v2627_v13 = vld [vmem:[#allocation17_spill] sm:$0xff] }
  0xfd   :  { %v584_v5 = vadd.f32 %v583_v27, %v582_v12  ;;  %v560_v8 = vadd.f32 %v559_v50, %v558_v21  ;;  %v2628_v21 = vld [vmem:[#allocation24_spill] sm:$0xff]  ;;  %v2629_v39 = vld [vmem:[#allocation25_spill] sm:$0xff]  ;;  %v575_v12 = vmin.f32 %v570_v47, %v574_v58  ;;  %vm631_vm1 = vcmp.eq.s32.totalorder %v1985_v7, 1 }
  0xfe   :  { %v556_v43 = vadd.f32 %v555_v14, %v554_v56 }
  0xff   :  { %v589_v60 = vmin.f32 %v584_v5, %v588_v38  ;;  %v576_v27 = vmax.f32 %v575_v12, 0.0 }
 0x100   :  { %v561_v15 = vmin.f32 %v556_v43, %v560_v8 }
 0x101   :  { %v475_v10 = vpop.permute.xlu1 %474  ;;  %907 = vperm.xlu2 %1250, %v1457_v25   ;;  %904 = vperm.xlu1 %1252, %v2627_v13   ;;  %v481_v37 = vpop.permute.xlu0 %480  ;;  %v590_v56 = vmax.f32 %v589_v60, 0.0  ;;  %v2055_v13 = vperm.slane %v576_v27, 0  ;;  %v2057_v58 = vperm.slane %v576_v27, 1  ;;  %v2631_v60 = vld [vmem:[#allocation14_spill] sm:$0xff]  ;;  %v2633_v27 = vmin.f32 %v1649_v52, %v1894_v24 }
 0x102   :  { %vm491_vm6 = vcmp.eq.s32.totalorder %v475_v10, 1  ;;  %928 = vperm.xlu0 %1251, %v1501_v36   ;;  %vm493_vm7 = vcmp.eq.s32.totalorder %v481_v37, 1  ;;  %v2027_v54 = vpop.permute.xlu2 %610  ;;  %v562_v10 = vmax.f32 %v561_v15, 0.0 }
 0x103   :  { %v2030_v48 = vsel %vm491_vm6, %v1791_v57, %v440_v45  ;;  %v2033_v9 = vsel %vm491_vm6, %v1793_v59, %v441_v6  ;;  %v2036_v29 = vsel %vm493_vm7, %v1791_v57, %v444_v53  ;;  %v2039_v25 = vsel %vm493_vm7, %v1793_v59, %v445_v18  ;;  %v2630_v57 = vld [vmem:[#allocation18_spill] sm:$0xff]  ;;  %v1256_v53 = vld [vmem:[#allocation7] sm:$0xff] }
 0x104   :  { %v541_v36 = vmin.f32 %v1771_v20, %v2030_v48  ;;  %v542_v26 = vmin.f32 %v1774_v40, %v2033_v9  ;;  %v545_v50 = vmin.f32 %v2628_v21, %v2036_v29  ;;  %v546_v45 = vmin.f32 %v2629_v39, %v2039_v25  ;;  %v1263_v40 = vld [vmem:[#allocation7 + $0x30] sm:$0xff] }
 0x105   :  { %v1368_v59 = vmov 4   ;;  %v2059_v47 = vperm.slane %v590_v56, 0  ;;  %v2063_v5 = vperm.slane %v562_v10, 0  ;;  %v2065_v38 = vperm.slane %v562_v10, 1  ;;  %v1264_v9 = vld [vmem:[#allocation7 + $0x10] sm:$0xff] }
 0x106   :  { %vm633_vm12 = vcmp.eq.s32.totalorder %v2027_v54, 1  ;;  %v2642_v20 = vmin.f32 %v1681_v1, %v1831_v61 }
 0x107   :  { %v651_v54 = vsel %vm628_vm13, %v2055_v13, %v2059_v47 }
 0x109   :  { %916 = vperm.xlu2 %1250, %v1470_v28   ;;  %913 = vperm.xlu1 %1252, %v2630_v57   ;;  %v2061_v28 = vperm.slane %v590_v56, 1 }
 0x10a   :  { %1253 = vset.pattern.permute.xlu0 %v1368_v59  ;;  %v2051_v14 = vpop.permute.xlu2 %619  ;;  %v593_v6 = vpop.permute.xlu1 %592 }
 0x10b   :  { %1003 = vperm.xlu0 %1253, %v1256_v53   ;;  %v2053_v18 = vpop.permute.xlu0 %598  ;;  %vm627_vm8 = vcmp.eq.s32.totalorder %v593_v6, 1  ;;  %vm636_vm0 = vcmp.eq.s32.totalorder %v2051_v14, 1 }
 0x10c   :  { %v649_v8 = vsel %vm627_vm8, %v2055_v13, %v2059_v47  ;;  %v650_v12 = vsel %vm627_vm8, %v2057_v58, %v2061_v28  ;;  %vm629_vm4 = vcmp.eq.s32.totalorder %v2053_v18, 1 }
 0x111   :  { %925 = vperm.xlu2 %1250, %v1482_v31   ;;  %922 = vperm.xlu1 %1252, %v1485_v32   ;;  %v2632_v31 = vmin.f32 %v1646_v51, %v1891_v4  ;;  %v1257_v4 = vld [vmem:[#allocation7 + $0x50] sm:$0xff] }
 0x112   :  { %v675_v37 = vpop.permute.xlu2 %674  ;;  %v602_v43 = vpop.permute.xlu1 %601 }
 0x113   :  { %vm709_vm9 = vcmp.eq.s32.totalorder %v675_v37, 1  ;;  %1048 = vperm.xlu0 %1253, %v2631_v60   ;;  %v2074_v15 = vpop.permute.xlu0 %613  ;;  %vm630_vm10 = vcmp.eq.s32.totalorder %v602_v43, 1 }
 0x114   :  { %v726_v57 = vsel %vm709_vm9, %v2063_v5, %v649_v8  ;;  %v727_v6 = vsel %vm709_vm9, %v2065_v38, %v650_v12  ;;  %v655_v37 = vsel %vm630_vm10, %v2055_v13, %v2059_v47  ;;  %v656_v51 = vsel %vm630_vm10, %v2057_v58, %v2061_v28 }
 0x115   :  { %v2081_v32 = vmin.f32 %v2632_v31, %v726_v57  ;;  %v2086_v56 = vmin.f32 %v2633_v27, %v727_v6  ;;  %v2635_v8 = vmin.f32 %v1690_v3, %v1942_v17  ;;  %v1258_v57 = vld [vmem:[#allocation7 + $0x20] sm:$0xff]  ;;  %v1259_v6 = vld [vmem:[#allocation7 + $0x8] sm:$0xff]  ;;  %v662_v3 = vsel %vm633_vm12, %v2057_v58, %v2061_v28 }
 0x116   :  { %vm634_vm5 = vcmp.eq.s32.totalorder %v2074_v15, 1 }
 0x117   :  { %v663_v1 = vsel %vm634_vm5, %v2055_v13, %v2059_v47  ;;  %v664_v18 = vsel %vm634_vm5, %v2057_v58, %v2061_v28 }
 0x119   :  { %934 = vperm.xlu2 %1250, %v1495_v34   ;;  %931 = vperm.xlu1 %1252, %v1498_v35   ;;  %v2634_v35 = vmin.f32 %v1687_v2, %v1939_v16  ;;  %v661_v2 = vsel %vm633_vm12, %v2055_v13, %v2059_v47  ;;  %v1260_v16 = vld [vmem:[#allocation7 + $0x58] sm:$0xff] }
 0x11a   :  { %v684_v53 = vpop.permute.xlu2 %683  ;;  %v2090_v10 = vpop.permute.xlu1 %607 }
 0x11b   :  { %vm712_vm11 = vcmp.eq.s32.totalorder %v684_v53, 1  ;;  %1053 = vperm.xlu0 %1253, %v1257_v4   ;;  %v2096_v52 = vpop.permute.xlu0 %622  ;;  %v652_v53 = vsel %vm628_vm13, %v2057_v58, %v2061_v28  ;;  %v2638_v4 = vmin.f32 %v2624_v11, %v1993_v19  ;;  %v1261_v19 = vld [vmem:[#allocation7 + $0x40] sm:$0xff]  ;;  %vm632_vm8 = vcmp.eq.s32.totalorder %v2090_v10, 1 }
 0x11c   :  { %v732_v24 = vsel %vm712_vm11, %v2063_v5, %v655_v37  ;;  %v733_v34 = vsel %vm712_vm11, %v2065_v38, %v656_v51  ;;  %v2637_v37 = vmin.f32 %v2623_v33, %v1990_v30  ;;  %v2640_v30 = vmin.f32 %v1634_v46, %v1809_v0 }
 0x11d   :  { %v2103_v43 = vmin.f32 %v2634_v35, %v732_v24  ;;  %v2108_v12 = vmin.f32 %v2635_v8, %v733_v34  ;;  %v2639_v8 = vmin.f32 %v1631_v44, %v1806_v22  ;;  %v667_v44 = vsel %vm636_vm0, %v2055_v13, %v2059_v47 }
 0x11e   :  { %v668_v22 = vsel %vm636_vm0, %v2057_v58, %v2061_v28  ;;  %v657_v0 = vsel %vm631_vm1, %v2055_v13, %v2059_v47  ;;  %vm637_vm9 = vcmp.eq.s32.totalorder %v2096_v52, 1 }
 0x11f   :  { %2636 = vst [vmem:[#allocation16_spill] sm:$0xff] %v2108_v12  ;;  %v669_v10 = vsel %vm637_vm9, %v2055_v13, %v2059_v47 }
 0x121   :  { %1255 = vset.pattern.permute.xlu2 %v1368_v59  ;;  %1254 = vset.pattern.permute.xlu1 %v1368_v59 }
 0x122   :  { %v693_v60 = vpop.permute.xlu2 %692  ;;  %1023 = vperm.xlu2 %1255, %v1258_v57   ;;  %1008 = vperm.xlu1 %1254, %v1259_v6   ;;  %v2112_v31 = vpop.permute.xlu1 %616  ;;  %v658_v6 = vsel %vm631_vm1, %v2057_v58, %v2061_v28 }
 0x123   :  { %vm715_vm14 = vcmp.eq.s32.totalorder %v693_v60, 1  ;;  %1058 = vperm.xlu0 %1253, %v1260_v16   ;;  %v678_v17 = vpop.permute.xlu0 %677  ;;  %v1262_v60 = vld [vmem:[#allocation7 + $0x28] sm:$0xff]  ;;  %vm635_vm12 = vcmp.eq.s32.totalorder %v2112_v31, 1 }
 0x124   :  { %v738_v59 = vsel %vm715_vm14, %v2063_v5, %v661_v2  ;;  %v739_v27 = vsel %vm715_vm14, %v2065_v38, %v662_v3  ;;  %vm710_vm15 = vcmp.eq.s32.totalorder %v678_v17, 1 }
 0x125   :  { %v2131_v51 = vmin.f32 %v2637_v37, %v738_v59  ;;  %v2136_v24 = vmin.f32 %v2638_v4, %v739_v27  ;;  %v728_v34 = vsel %vm710_vm15, %v2063_v5, %v651_v54  ;;  %v729_v35 = vsel %vm710_vm15, %v2065_v38, %v652_v53  ;;  %v2643_v53 = vld [vmem:[#allocation36_spill] sm:$0xff] }
 0x126   :  { %v2143_v41 = vmin.f32 %v2639_v8, %v728_v34  ;;  %v2148_v33 = vmin.f32 %v2640_v30, %v729_v35  ;;  %v2641_v54 = vmin.f32 %v1678_v62, %v1828_v55  ;;  %v654_v62 = vsel %vm629_vm4, %v2057_v58, %v2061_v28  ;;  %v2645_v34 = vld [vmem:[#allocation19_spill] sm:$0xff]  ;;  %v2646_v35 = vld [vmem:[#allocation37_spill] sm:$0xff] }
 0x127   :  { %v2644_v37 = vmin.f32 %v1573_v49, %v2643_v53  ;;  %v2647_v8 = vmin.f32 %v2645_v34, %v2646_v35  ;;  %v2658_v53 = vld [vmem:[#allocation39_spill] sm:$0xff] }
 0x12a   :  { %v702_v11 = vpop.permute.xlu2 %701  ;;  %1043 = vperm.xlu2 %1255, %v1261_v19   ;;  %1028 = vperm.xlu1 %1254, %v1262_v60   ;;  %v2152_v57 = vpop.permute.xlu1 %625  ;;  %v2648_v60 = vld [vmem:[#allocation26_spill] sm:$0xff] }
 0x12b   :  { %vm718_vm2 = vcmp.eq.s32.totalorder %v702_v11, 1  ;;  %v687_v46 = vpop.permute.xlu0 %686  ;;  %vm638_vm14 = vcmp.eq.s32.totalorder %v2152_v57, 1 }
 0x12c   :  { %v744_v7 = vsel %vm718_vm2, %v2063_v5, %v667_v44  ;;  %v745_v14 = vsel %vm718_vm2, %v2065_v38, %v668_v22  ;;  %vm713_vm3 = vcmp.eq.s32.totalorder %v687_v46, 1  ;;  %v2649_v44 = vld [vmem:[#allocation32_spill] sm:$0xff] }
 0x12d   :  { %v2167_v2 = vmin.f32 %v541_v36, %v744_v7  ;;  %v2172_v3 = vmin.f32 %v542_v26, %v745_v14  ;;  %v734_v16 = vsel %vm713_vm3, %v2063_v5, %v657_v0  ;;  %v735_v17 = vsel %vm713_vm3, %v2065_v38, %v658_v6  ;;  %v2651_v0 = vld [vmem:[#allocation27_spill] sm:$0xff]  ;;  %v2652_v7 = vld [vmem:[#allocation33_spill] sm:$0xff]  ;;  %v1265_v6 = vld [vmem:[#allocation7 + $0x38] sm:$0xff] }
 0x12e   :  { %v2179_v59 = vmin.f32 %v2641_v54, %v734_v16  ;;  %v2184_v48 = vmin.f32 %v2642_v20, %v735_v17  ;;  %v653_v26 = vsel %vm629_vm4, %v2055_v13, %v2059_v47  ;;  %v2650_v22 = vmin.f32 %v2648_v60, %v2649_v44  ;;  %v1266_v16 = vld [vmem:[#allocation7 + $0x18] sm:$0xff]  ;;  %v2663_v44 = vld [vmem:[#allocation31_spill] sm:$0xff] }
 0x12f   :  { %v2653_v14 = vmin.f32 %v2651_v0, %v2652_v7  ;;  %v659_v54 = vsel %vm632_vm8, %v2055_v13, %v2059_v47  ;;  %v660_v20 = vsel %vm632_vm8, %v2057_v58, %v2061_v28 }
 0x132   :  { %1033 = vperm.xlu2 %1255, %v1263_v40   ;;  %1013 = vperm.xlu1 %1254, %v1264_v9   ;;  %v681_v36 = vpop.permute.xlu1 %680 }
 0x133   :  { %vm711_vm6 = vcmp.eq.s32.totalorder %v681_v36, 1  ;;  %v696_v55 = vpop.permute.xlu0 %695  ;;  %v2194_v61 = vpop.permute.xlu2 %819  ;;  %v670_v36 = vsel %vm637_vm9, %v2057_v58, %v2061_v28 }
 0x134   :  { %v730_v15 = vsel %vm711_vm6, %v2063_v5, %v653_v26  ;;  %v731_v27 = vsel %vm711_vm6, %v2065_v38, %v654_v62  ;;  %vm716_vm7 = vcmp.eq.s32.totalorder %v696_v55, 1  ;;  %v2655_v55 = vld [vmem:[#allocation38_spill] sm:$0xff]  ;;  %vm854_vm1 = vcmp.eq.s32.totalorder %v2194_v61, 1 }
 0x135   :  { %v2203_v4 = vmin.f32 %v2644_v37, %v730_v15  ;;  %v2208_v30 = vmin.f32 %v2647_v8, %v731_v27  ;;  %v740_v11 = vsel %vm716_vm7, %v2063_v5, %v663_v1  ;;  %v741_v19 = vsel %vm716_vm7, %v2065_v38, %v664_v18  ;;  %v2654_v1 = vld [vmem:[#allocation20_spill] sm:$0xff]  ;;  %v2657_v27 = vld [vmem:[#allocation21_spill] sm:$0xff]  ;;  %v2660_v8 = vld [vmem:[#allocation30_spill] sm:$0xff] }
 0x136   :  { %v2215_v46 = vmin.f32 %v2650_v22, %v740_v11  ;;  %v2220_v49 = vmin.f32 %v2653_v14, %v741_v19  ;;  %v2656_v18 = vmin.f32 %v2654_v1, %v2655_v55  ;;  %v2659_v37 = vmin.f32 %v2657_v27, %v2658_v53  ;;  %v2661_v11 = vld [vmem:[#allocation34_spill] sm:$0xff]  ;;  %v2664_v22 = vld [vmem:[#allocation35_spill] sm:$0xff] }
 0x137   :  { %v2662_v19 = vmin.f32 %v2660_v8, %v2661_v11  ;;  %v2665_v0 = vmin.f32 %v2663_v44, %v2664_v22  ;;  %v2666_v1 = vld [vmem:[#allocation15_spill] sm:$0xff]  ;;  %v2668_v27 = vmin.f32 %v2626_v23, %v1999_v63  ;;  %v796_v8 = vstv %s2226_s5 }
 0x138   :  { %v2667_v55 = vmin.f32 %v2625_v42, %v2666_v1  ;;  %v810_v42 = vstv %s2278_s12  ;;  %v782_v63 = vstv %s2283_s14 }
 0x13a   :  { %1038 = vperm.xlu2 %1255, %v1265_v6   ;;  %1018 = vperm.xlu1 %1254, %v1266_v16   ;;  %v690_v17 = vpop.permute.xlu1 %689  ;;  %v665_v6 = vsel %vm635_vm12, %v2055_v13, %v2059_v47  ;;  %v666_v16 = vsel %vm635_vm12, %v2057_v58, %v2061_v28 }
 0x13b   :  { %vm714_vm10 = vcmp.eq.s32.totalorder %v690_v17, 1  ;;  %v705_v40 = vpop.permute.xlu0 %704  ;;  %v2242_v9 = vpop.permute.xlu2 %828  ;;  %v775_v17 = vld [vmem:[#allocation2 + $0x3] ss:$4 sm:$0x3] }
 0x13c   :  { %v736_v26 = vsel %vm714_vm10, %v2063_v5, %v659_v54  ;;  %v737_v62 = vsel %vm714_vm10, %v2065_v38, %v660_v20  ;;  %vm719_vm11 = vcmp.eq.s32.totalorder %v705_v40, 1  ;;  %v794_v54 = vstv %s2222_s4 }
 0x13d   :  { %v2255_v15 = vmin.f32 %v2656_v18, %v736_v26  ;;  %v2260_v34 = vmin.f32 %v2659_v37, %v737_v62  ;;  %v746_v52 = vsel %vm719_vm11, %v2063_v5, %v669_v10  ;;  %v747_v35 = vsel %vm719_vm11, %v2065_v38, %v670_v36 }
 0x13e   :  { %v2269_v60 = vmin.f32 %v2662_v19, %v746_v52  ;;  %v2274_v7 = vmin.f32 %v2665_v0, %v747_v35  ;;  %v798_v20 = vstv %s2228_s6  ;;  %v808_v26 = vstv %s2240_s8 }
 0x13f   :  { %v812_v62 = vstv %s2248_s9  ;;  %v795_v37 = vmul.f32 %v794_v54, %v775_v17  ;;  %v780_v52 = vstv %s2264_s10  ;;  %v784_v35 = vstv %s2276_s11 }
 0x140   :  { %v799_v11 = vmul.f32 %v798_v20, %v775_v17  ;;  %v800_v19 = vstv %s2230_s7  ;;  %v809_v44 = vmul.f32 %v808_v26, %v775_v17  ;;  %v813_v22 = vmul.f32 %v812_v62, %v775_v17 }
 0x141   :  { %v814_v0 = vstv %s2281_s13  ;;  %v671_v54 = vsel %vm638_vm14, %v2055_v13, %v2059_v47  ;;  %vm857_vm5 = vcmp.eq.s32.totalorder %v2242_v9, 1 }
 0x142   :  { %v699_v14 = vpop.permute.xlu1 %698  ;;  %v801_v20 = vadd.f32 %v800_v19, %v799_v11  ;;  %v811_v26 = vadd.f32 %v810_v42, %v809_v44  ;;  %v815_v62 = vadd.f32 %v814_v0, %v813_v22 }
 0x143   :  { %vm717_vm13 = vcmp.eq.s32.totalorder %v699_v14, 1  ;;  %v2292_v31 = vpop.permute.xlu2 %834  ;;  %v781_v14 = vmul.f32 %v780_v52, %v775_v17 }
 0x144   :  { %v742_v10 = vsel %vm717_vm13, %v2063_v5, %v665_v6  ;;  %v743_v40 = vsel %vm717_vm13, %v2065_v38, %v666_v16  ;;  %v2297_v36 = vpop.permute.xlu0 %822  ;;  %v785_v6 = vmul.f32 %v784_v35, %v775_v17  ;;  %v797_v16 = vadd.f32 %v796_v8, %v795_v37 }
 0x145   :  { %v2304_v18 = vmin.f32 %v2667_v55, %v742_v10  ;;  %v2309_v53 = vmin.f32 %v2668_v27, %v743_v40  ;;  %v786_v10 = vstv %s2285_s15  ;;  %v672_v40 = vsel %vm638_vm14, %v2057_v58, %v2061_v28 }
 0x146   :  { %v783_v58 = vadd.f32 %v782_v63, %v781_v14  ;;  %v787_v47 = vadd.f32 %v786_v10, %v785_v6  ;;  %v802_v28 = vmin.f32 %v797_v16, %v801_v20  ;;  %v816_v37 = vmin.f32 %v811_v26, %v815_v62 }
 0x147   :  { %vm859_vm4 = vcmp.eq.s32.totalorder %v2292_v31, 1  ;;  %vm855_vm10 = vcmp.eq.s32.totalorder %v2297_v36, 1 }
 0x148   :  { %v788_v52 = vmin.f32 %v783_v58, %v787_v47  ;;  %v803_v35 = vmax.f32 %v802_v28, 0.0  ;;  %v817_v11 = vmax.f32 %v816_v37, 0.0 }
 0x14a   :  { %v708_v23 = vpop.permute.xlu1 %707  ;;  %v789_v29 = vmax.f32 %v788_v52, 0.0  ;;  %v2344_v21 = vperm.slane %v803_v35, 0  ;;  %v2354_v19 = vperm.slane %v817_v11, 1 }
 0x14b   :  { %vm720_vm15 = vcmp.eq.s32.totalorder %v708_v23, 1  ;;  %v2324_v57 = vpop.permute.xlu2 %843 }
 0x14c   :  { %v748_v1 = vsel %vm720_vm15, %v2063_v5, %v671_v54  ;;  %v749_v17 = vsel %vm720_vm15, %v2065_v38, %v672_v40  ;;  %v2328_v55 = vpop.permute.xlu0 %837  ;;  %v2348_v25 = vperm.slane %v789_v29, 0  ;;  %v2350_v39 = vperm.slane %v789_v29, 1 }
 0x14d   :  { %v2333_v27 = vmin.f32 %v545_v50, %v748_v1  ;;  %v2338_v13 = vmin.f32 %v546_v45, %v749_v17  ;;  %v2346_v50 = vperm.slane %v817_v11, 0  ;;  %v2352_v45 = vperm.slane %v803_v35, 1 }
 0x14e   :  { %vm860_vm8 = vcmp.eq.s32.totalorder %v2328_v55, 1  ;;  %vm862_vm12 = vcmp.eq.s32.totalorder %v2324_v57, 1 }
 0x14f   :  { %v876_v6 = vsel %vm854_vm1, %v2344_v21, %v2346_v50  ;;  %v877_v61 = vsel %vm854_vm1, %v2352_v45, %v2354_v19  ;;  %v886_v17 = vsel %vm859_vm4, %v2344_v21, %v2346_v50  ;;  %v887_v58 = vsel %vm859_vm4, %v2352_v45, %v2354_v19 }
 0x150   :  { %v882_v28 = vsel %vm857_vm5, %v2344_v21, %v2346_v50  ;;  %v883_v9 = vsel %vm857_vm5, %v2352_v45, %v2354_v19 }
 0x153   :  { %v2340_v5 = vpop.permute.xlu2 %852  ;;  %v826_v38 = vpop.permute.xlu1 %825 }
 0x154   :  { %v2342_v8 = vpop.permute.xlu0 %846  ;;  %vm856_vm0 = vcmp.eq.s32.totalorder %v826_v38, 1 }
 0x155   :  { %v880_v42 = vsel %vm856_vm0, %v2344_v21, %v2346_v50  ;;  %v881_v0 = vsel %vm856_vm0, %v2352_v45, %v2354_v19  ;;  %vm863_vm13 = vcmp.eq.s32.totalorder %v2342_v8, 1 }
 0x15b   :  { %v908_v44 = vpop.permute.xlu2 %907  ;;  %v2357_v22 = vpop.permute.xlu1 %831 }
 0x15c   :  { %vm938_vm2 = vcmp.eq.s32.totalorder %v908_v44, 1  ;;  %v902_v14 = vpop.permute.xlu0 %901  ;;  %vm858_vm4 = vcmp.eq.s32.totalorder %v2357_v22, 1 }
 0x15d   :  { %v2366_v16 = vsel %vm938_vm2, %v2348_v25, %v880_v42  ;;  %v2369_v23 = vsel %vm938_vm2, %v2350_v39, %v881_v0  ;;  %vm936_vm3 = vcmp.eq.s32.totalorder %v902_v14, 1  ;;  %vm865_vm2 = vcmp.eq.s32.totalorder %v2340_v5, 1 }
 0x15e   :  { %v2378_v54 = vsel %vm936_vm3, %v2348_v25, %v876_v6  ;;  %v2381_v40 = vsel %vm936_vm3, %v2350_v39, %v877_v61  ;;  %v888_v6 = vsel %vm860_vm8, %v2344_v21, %v2346_v50  ;;  %v889_v61 = vsel %vm860_vm8, %v2352_v45, %v2354_v19 }
 0x15f   :  { %vm1106_vm8 = vcmask 1040384  }
 0x163   :  { %v917_v62 = vpop.permute.xlu2 %916  ;;  %v2389_v1 = vpop.permute.xlu1 %840 }
 0x164   :  { %vm941_vm6 = vcmp.eq.s32.totalorder %v917_v62, 1  ;;  %v911_v47 = vpop.permute.xlu0 %910 }
 0x165   :  { %v2398_v37 = vsel %vm941_vm6, %v2348_v25, %v886_v17  ;;  %v2401_v31 = vsel %vm941_vm6, %v2350_v39, %v887_v58  ;;  %vm939_vm7 = vcmp.eq.s32.totalorder %v911_v47, 1  ;;  %vm861_vm6 = vcmp.eq.s32.totalorder %v2389_v1, 1 }
 0x166   :  { %v2410_v35 = vsel %vm939_vm7, %v2348_v25, %v882_v28  ;;  %v2413_v11 = vsel %vm939_vm7, %v2350_v39, %v883_v9  ;;  %v878_v9 = vsel %vm855_vm10, %v2344_v21, %v2346_v50 }
 0x167   :  { %2669 = vst [vmem:[#allocation28_spill] sm:$0xff] %v2410_v35 }
 0x168   :  { %2670 = vst [vmem:[#allocation29_spill] sm:$0xff] %v2413_v11 }
 0x16b   :  { %v926_v42 = vpop.permute.xlu2 %925  ;;  %v850_v0 = vpop.permute.xlu1 %849 }
 0x16c   :  { %v920_v14 = vpop.permute.xlu0 %919  ;;  %vm944_vm14 = vcmp.eq.s32.totalorder %v926_v42, 1  ;;  %vm864_vm0 = vcmp.eq.s32.totalorder %v850_v0, 1 }
 0x16d   :  { %vm942_vm9 = vcmp.eq.s32.totalorder %v920_v14, 1  ;;  %v879_v14 = vsel %vm855_vm10, %v2352_v45, %v2354_v19  ;;  %v896_v35 = vsel %vm864_vm0, %v2344_v21, %v2346_v50 }
 0x16e   :  { %v2425_v62 = vsel %vm942_vm9, %v2348_v25, %v888_v6  ;;  %v2428_v17 = vsel %vm942_vm9, %v2350_v39, %v889_v61 }
 0x173   :  { %v935_v47 = vpop.permute.xlu2 %934  ;;  %v905_v28 = vpop.permute.xlu1 %904 }
 0x174   :  { %vm937_vm11 = vcmp.eq.s32.totalorder %v905_v28, 1  ;;  %v929_v6 = vpop.permute.xlu0 %928  ;;  %vm947_vm3 = vcmp.eq.s32.totalorder %v935_v47, 1 }
 0x175   :  { %v2440_v61 = vsel %vm937_vm11, %v2348_v25, %v878_v9  ;;  %v2443_v44 = vsel %vm937_vm11, %v2350_v39, %v879_v14  ;;  %vm945_vm15 = vcmp.eq.s32.totalorder %v929_v6, 1  ;;  %v892_v9 = vsel %vm862_vm12, %v2344_v21, %v2346_v50 }
 0x176   :  { %v979_v29 = vmin.f32 %v2143_v41, %v2440_v61  ;;  %v980_v36 = vmin.f32 %v2148_v33, %v2443_v44  ;;  %v893_v41 = vsel %vm862_vm12, %v2352_v45, %v2354_v19  ;;  %v894_v33 = vsel %vm863_vm13, %v2344_v21, %v2346_v50 }
 0x177   :  { %v895_v44 = vsel %vm863_vm13, %v2352_v45, %v2354_v19  ;;  %v969_v57 = vsel %vm944_vm14, %v2348_v25, %v892_v9  ;;  %v970_v14 = vsel %vm944_vm14, %v2350_v39, %v893_v41  ;;  %v971_v8 = vsel %vm945_vm15, %v2348_v25, %v894_v33 }
 0x178   :  { %v972_v42 = vsel %vm945_vm15, %v2350_v39, %v895_v44  ;;  %v993_v61 = vmin.f32 %v2304_v18, %v969_v57  ;;  %v994_v55 = vmin.f32 %v2309_v53, %v970_v14  ;;  %v995_v38 = vmin.f32 %v2167_v2, %v971_v8 }
 0x179   :  { %v996_v52 = vmin.f32 %v2172_v3, %v972_v42  ;;  %v897_v18 = vsel %vm864_vm0, %v2352_v45, %v2354_v19  ;;  %v2671_v8 = vmin.f32 %v2081_v32, %v2378_v54 }
 0x17b   :  { %v2449_v10 = vpop.permute.xlu1 %913 }
 0x17c   :  { %v2452_v63 = vpop.permute.xlu2 %1023  ;;  %vm940_vm5 = vcmp.eq.s32.totalorder %v2449_v10, 1 }
 0x17d   :  { %v1004_v28 = vpop.permute.xlu0 %1003 }
 0x17e   :  { %v1061_v42 = vmul.f32 %v1004_v28, %v2671_v8 }
 0x183   :  { %v2467_v6 = vpop.permute.xlu1 %922 }
 0x184   :  { %v1044_v58 = vpop.permute.xlu2 %1043  ;;  %vm943_vm7 = vcmp.eq.s32.totalorder %v2467_v6, 1 }
 0x185   :  { %v1077_v26 = vmul.f32 %v1044_v58, %v993_v61  ;;  %v1078_v20 = vmul.f32 %v1044_v58, %v994_v55  ;;  %v1049_v9 = vpop.permute.xlu0 %1048 }
 0x186   :  { %v1079_v11 = vmul.f32 %v1049_v9, %v995_v38  ;;  %v1080_v41 = vmul.f32 %v1049_v9, %v996_v52  ;;  %v898_v52 = vsel %vm865_vm2, %v2344_v21, %v2346_v50  ;;  %v899_v38 = vsel %vm865_vm2, %v2352_v45, %v2354_v19 }
 0x187   :  { %v975_v5 = vsel %vm947_vm3, %v2348_v25, %v898_v52 }
 0x188   :  { %v1139_v12 = vadd.f32 %v1079_v11, %v1077_v26  ;;  %v1148_v33 = vadd.f32 %v1080_v41, %v1078_v20  ;;  %v999_v14 = vmin.f32 %v2333_v27, %v975_v5 }
 0x18b   :  { %v932_v44 = vpop.permute.xlu1 %931 }
 0x18c   :  { %vm946_vm1 = vcmp.eq.s32.totalorder %v932_v44, 1  ;;  %v1034_v47 = vpop.permute.xlu2 %1033 }
 0x18d   :  { %v973_v2 = vsel %vm946_vm1, %v2348_v25, %v896_v35  ;;  %v974_v3 = vsel %vm946_vm1, %v2350_v39, %v897_v18  ;;  %v1054_v53 = vpop.permute.xlu0 %1053  ;;  %v976_v35 = vsel %vm947_vm3, %v2350_v39, %v899_v38 }
 0x18e   :  { %v997_v26 = vmin.f32 %v2269_v60, %v973_v2  ;;  %v998_v20 = vmin.f32 %v2274_v7, %v974_v3  ;;  %v884_v60 = vsel %vm858_vm4, %v2344_v21, %v2346_v50  ;;  %v885_v7 = vsel %vm858_vm4, %v2352_v45, %v2354_v19 }
 0x18f   :  { %v1000_v22 = vmin.f32 %v2338_v13, %v976_v35  ;;  %v962_v44 = vsel %vm940_vm5, %v2350_v39, %v885_v7 }
 0x190   :  { %v1081_v11 = vmul.f32 %v1054_v53, %v997_v26  ;;  %v1082_v0 = vmul.f32 %v1054_v53, %v998_v20 }
 0x192   :  { %v1140_v58 = vadd.f32 %v1139_v12, %v1081_v11  ;;  %v1149_v55 = vadd.f32 %v1148_v33, %v1082_v0  ;;  %v2672_v12 = vmin.f32 %v2086_v56, %v2381_v40  ;;  %v961_v33 = vsel %vm940_vm5, %v2348_v25, %v884_v60 }
 0x193   :  { %v985_v56 = vmin.f32 %v2179_v59, %v961_v33  ;;  %v986_v40 = vmin.f32 %v2184_v48, %v962_v44  ;;  %v2673_v48 = vmin.f32 %v2255_v15, %v2398_v37  ;;  %v2675_v0 = vmin.f32 %v2131_v51, %v2425_v62 }
 0x194   :  { %v1009_v57 = vpop.permute.xlu1 %1008  ;;  %v1062_v10 = vmul.f32 %v1004_v28, %v2672_v12 }
 0x195   :  { %v1063_v61 = vmul.f32 %v1009_v57, %v979_v29  ;;  %v1064_v9 = vmul.f32 %v1009_v57, %v980_v36  ;;  %v1059_v41 = vpop.permute.xlu0 %1058  ;;  %v890_v29 = vsel %vm861_vm6, %v2344_v21, %v2346_v50  ;;  %v891_v36 = vsel %vm861_vm6, %v2352_v45, %v2354_v19  ;;  %v1039_v19 = vpop.permute.xlu2 %1038 }
 0x196   :  { %v1083_v18 = vmul.f32 %v1059_v41, %v999_v14  ;;  %v1084_v2 = vmul.f32 %v1059_v41, %v1000_v22  ;;  %v967_v1 = vsel %vm943_vm7, %v2348_v25, %v890_v29  ;;  %v968_v53 = vsel %vm943_vm7, %v2350_v39, %v891_v36  ;;  %v2683_v29 = vld [vmem:[#allocation16_spill] sm:$0xff]  ;;  %v2684_v36 = vld [vmem:[#allocation29_spill] sm:$0xff] }
 0x197   :  { %v1085_v27 = vadd.f32 %v1063_v61, %v1061_v42  ;;  %v1094_v13 = vadd.f32 %v1064_v9, %v1062_v10  ;;  %v1069_v52 = vmul.f32 %v2452_v63, %v985_v56  ;;  %v1070_v59 = vmul.f32 %v2452_v63, %v986_v40 }
 0x198   :  { %v1141_v32 = vadd.f32 %v1140_v58, %v1083_v18  ;;  %v1150_v54 = vadd.f32 %v1149_v55, %v1084_v2  ;;  %v2674_v50 = vmin.f32 %v2260_v34, %v2401_v31  ;;  %v991_v25 = vmin.f32 %v2215_v46, %v967_v1 }
 0x199   :  { %v992_v39 = vmin.f32 %v2220_v49, %v968_v53  ;;  %v1073_v5 = vmul.f32 %v1034_v47, %v2675_v0  ;;  %v2676_v63 = vmin.f32 %v2136_v24, %v2428_v17  ;;  %v1109_v57 = vlaneseq }
 0x19a   :  { %v1142_v28 = vrot.slane %v1141_v32, 4  ;;  %v1151_v3 = vrot.slane %v1150_v54, 4  ;;  %v1075_v31 = vmul.f32 %v1039_v19, %v991_v25  ;;  %v2677_v24 = vmin.f32 %v2203_v4, %v2366_v16 }
 0x19b   :  { %v1074_v15 = vmul.f32 %v1034_v47, %v2676_v63  ;;  %v1076_v55 = vmul.f32 %v1039_v19, %v992_v39  ;;  %v2678_v47 = vmin.f32 %v2208_v30, %v2369_v23  ;;  %vm2536_vm9 = vcmp.lt.s32.totalorder %v1109_v57, 256  ;;  %v2681_v23 = vld [vmem:[#allocation28_spill] sm:$0xff] }
 0x19c   :  { %v1143_v26 = vadd.f32 %v1142_v28, %v1141_v32  ;;  %v1152_v6 = vadd.f32 %v1151_v3, %v1150_v54  ;;  %v1029_v20 = vpop.permute.xlu1 %1028  ;;  %v2682_v56 = vmin.f32 %v2103_v43, %v2681_v23  ;;  %v2685_v28 = vmin.f32 %v2683_v29, %v2684_v36 }
 0x19d   :  { %v1071_v21 = vmul.f32 %v1029_v20, %v2673_v48  ;;  %v1072_v45 = vmul.f32 %v1029_v20, %v2674_v50 }
 0x19e   :  { %v1144_v38 = vrot.slane %v1143_v26, 2  ;;  %v1153_v11 = vrot.slane %v1152_v6, 2 }
 0x19f   :  { %v1114_v37 = vadd.f32 %v1071_v21, %v1069_v52  ;;  %v1123_v35 = vadd.f32 %v1072_v45, %v1070_v59 }
 0x1a0   :  { %v1145_v58 = vadd.f32 %v1144_v38, %v1143_v26  ;;  %v1154_v34 = vadd.f32 %v1153_v11, %v1152_v6 }
 0x1a1   :  { %v1115_v60 = vadd.f32 %v1114_v37, %v1073_v5  ;;  %v1124_v46 = vadd.f32 %v1123_v35, %v1074_v15 }
 0x1a2   :  { %v1146_v7 = vrot.slane %v1145_v58, 1  ;;  %v1155_v49 = vrot.slane %v1154_v34, 1 }
 0x1a3   :  { %v1116_v14 = vadd.f32 %v1115_v60, %v1075_v31  ;;  %v1125_v22 = vadd.f32 %v1124_v46, %v1076_v55 }
 0x1a4   :  { %v1156_v8 = vadd.f32 %v1155_v49, %v1154_v34  ;;  %v1014_v51 = vpop.permute.xlu1 %1013  ;;  %v1147_v10 = vadd.f32 %v1146_v7, %v1145_v58 }
 0x1a5   :  { %v1117_v62 = vrot.slane %v1116_v14, 4  ;;  %v1126_v42 = vrot.slane %v1125_v22, 4  ;;  %v1065_v17 = vmul.f32 %v1014_v51, %v2677_v24  ;;  %v1066_v12 = vmul.f32 %v1014_v51, %v2678_v47 }
 0x1a6   :  { %v1159_v61 = vrot.slane %v1156_v8, 7 }
 0x1a7   :  { %v1118_v41 = vadd.f32 %v1117_v62, %v1116_v14  ;;  %v1127_v33 = vadd.f32 %v1126_v42, %v1125_v22  ;;  %v1086_v44 = vadd.f32 %v1085_v27, %v1065_v17  ;;  %v1095_v18 = vadd.f32 %v1094_v13, %v1066_v12 }
 0x1a8   :  { %v1160_v2 = vsel %vm1106_vm8, %v1147_v10, %v1159_v61 }
 0x1a9   :  { %v1119_v32 = vrot.slane %v1118_v41, 2  ;;  %v1128_v54 = vrot.slane %v1127_v33, 2  ;;  %1163 = vst.msk [vmem:[#allocation9 + $0x2] ss:$4 sm:$0x3] %vm2536_vm9, %v1160_v2 }
 0x1ab   :  { %v1120_v4 = vadd.f32 %v1119_v32, %v1118_v41  ;;  %v1129_v30 = vadd.f32 %v1128_v54, %v1127_v33 }
 0x1ac   :  { %v1019_v16 = vpop.permute.xlu1 %1018 }
 0x1ad   :  { %v1067_v40 = vmul.f32 %v1019_v16, %v2682_v56  ;;  %v1068_v3 = vmul.f32 %v1019_v16, %v2685_v28  ;;  %v1121_v27 = vrot.slane %v1120_v4, 1  ;;  %v1130_v13 = vrot.slane %v1129_v30, 1 }
 0x1af   :  { %v1087_v1 = vadd.f32 %v1086_v44, %v1067_v40  ;;  %v1096_v53 = vadd.f32 %v1095_v18, %v1068_v3  ;;  %v1131_v26 = vadd.f32 %v1130_v13, %v1129_v30  ;;  %v1122_v52 = vadd.f32 %v1121_v27, %v1120_v4 }
 0x1b1   :  { %v1088_v6 = vrot.slane %v1087_v1, 4  ;;  %v1097_v20 = vrot.slane %v1096_v53, 4  ;;  %v1134_v59 = vrot.slane %v1131_v26, 7 }
 0x1b3   :  { %v1089_v48 = vadd.f32 %v1088_v6, %v1087_v1  ;;  %v1098_v21 = vadd.f32 %v1097_v20, %v1096_v53  ;;  %v1135_v50 = vsel %vm1106_vm8, %v1122_v52, %v1134_v59 }
 0x1b4   :  { %1138 = vst.msk [vmem:[#allocation9 + $0x1] ss:$4 sm:$0x3] %vm2536_vm9, %v1135_v50 }
 0x1b5   :  { %v1090_v43 = vrot.slane %v1089_v48, 2  ;;  %v1099_v45 = vrot.slane %v1098_v21, 2 }
 0x1b7   :  { %v1091_v19 = vadd.f32 %v1090_v43, %v1089_v48  ;;  %v1100_v25 = vadd.f32 %v1099_v45, %v1098_v21 }
 0x1b9   :  { %v1092_v39 = vrot.slane %v1091_v19, 1  ;;  %v1101_v38 = vrot.slane %v1100_v25, 1 }
 0x1bb   :  { %v1102_v11 = vadd.f32 %v1101_v38, %v1100_v25  ;;  %v1093_v0 = vadd.f32 %v1092_v39, %v1091_v19 }
 0x1bd   :  { %v1105_v5 = vrot.slane %v1102_v11, 7 }
 0x1bf   :  { %v1107_v63 = vsel %vm1106_vm8, %v1093_v0, %v1105_v5 }
 0x1c0   :  { %1113 = vst.msk [vmem:[#allocation9] ss:$4 sm:$0x3] %vm2536_vm9, %v1107_v63 }
 0x1c1   :  { %1174 = dma.vmem_to_hbm [thread:$0]  %s1170_s17, 128, %s1172_s20, [#allocation4]  }
 0x1c2   :  { %1357 = dma.done.wait [#allocation4], 128  }
 0x1c3   :  { %1358 = vsyncadd [#allocation4], 4294967168 }
 0x1c4   :  { %1179 = vsyncpa [#allocation3], 1 }
 0x1c5   :  { %1180 = vsyncpa [#allocation8], 1 }
 0x1c6   :  { %1181 = vsyncpa [#allocation4], 1 }
 0x1c7   :  { %1182 = vsyncpa [#allocation5], 1 }

</bundles_post_ra>
